<compile_context>
chip_gen: v6e
topology: v6e:2x2x1
jax: 0.10.0
libtpu: 0.0.40
codegen_flags: <defaults>
</compile_context>

<pallas_src>
import math

import jax
import jax.numpy as jnp
from jax.experimental import pallas as pl
from jax.experimental.pallas import tpu as pltpu

# ----------------------------- model config ---------------------------------
VOCAB = 100
HID = 32
NHEAD = 2
DHEAD = HID // NHEAD
FFN = 64
NLAYERS = 2
MAXPOS = 16
LN_EPS = 1e-12          # BERT LayerNorm eps
REPRESENTATION = 0      # default in BiEncoder.__init__ -> take token 0 (CLS)
NEG_INF = -1e9          # HF-style additive attention mask value


# ----------------------------- fused Pallas kernel ---------------------------
def _fused_encoder_kernel(x_ref, bias_ref, sel_ref,
                          emb_g_ref, emb_b_ref,
                          qkv_w_ref, qkv_b_ref,
                          o_w_ref, o_b_ref,
                          ln1_g_ref, ln1_b_ref,
                          ffn1_w_ref, ffn1_b_ref,
                          ffn2_w_ref, ffn2_b_ref,
                          ln2_g_ref, ln2_b_ref,
                          out_ref):
    """Whole encoder (both batched encoders) in one kernel invocation.

    x_ref    : [M, HID]        embedded tokens (M = 2B * S, q + ctx batched)
    bias_ref : [M, M]          block-diagonal + padding additive attention bias
    sel_ref  : [BT, M]         CLS selector (mask at REPRESENTATION folded in)
    weights  : stacked per-layer params, leading dim NLAYERS
    out_ref  : [BT, HID]       masked CLS representations
    """

    def layer_norm(h, g, b):
        mu = jnp.mean(h, axis=-1, keepdims=True)
        d = h - mu
        var = jnp.mean(d * d, axis=-1, keepdims=True)
        return d * jax.lax.rsqrt(var + LN_EPS) * g + b

    # Embedding LayerNorm (no zero-residual DMA).
    x = layer_norm(x_ref[...], emb_g_ref[...], emb_b_ref[...])
    bias = bias_ref[...]
    scale = 1.0 / math.sqrt(DHEAD)

    for li in range(NLAYERS):          # static unroll over layers
        # ---- self-attention: packed QKV projection in one MXU pass ----
        qkv = (jnp.dot(x, qkv_w_ref[li], preferred_element_type=jnp.float32)
               + qkv_b_ref[li])                               # [M, 3*HID]

        ow = o_w_ref[li]                                      # [HID, HID]
        attn_acc = None
        for h in range(NHEAD):                                # static unroll
            q = qkv[:, h * DHEAD:(h + 1) * DHEAD]             # [M, DHEAD]
            k = qkv[:, HID + h * DHEAD:HID + (h + 1) * DHEAD]
            v = qkv[:, 2 * HID + h * DHEAD:2 * HID + (h + 1) * DHEAD]

            s = jnp.dot(q, k.T, preferred_element_type=jnp.float32) * scale + bias
            s = s - jnp.max(s, axis=-1, keepdims=True)
            p = jnp.exp(s)
            p = p * pl.reciprocal(jnp.sum(p, axis=-1, keepdims=True), approx=True)
            ctx = jnp.dot(p, v, preferred_element_type=jnp.float32)   # [M, DHEAD]

            # Output projection folded per-head (avoids a concatenate):
            #   attn @ Wo == sum_h ctx_h @ Wo[h*DHEAD:(h+1)*DHEAD, :]
            contrib = jnp.dot(ctx, ow[h * DHEAD:(h + 1) * DHEAD, :],
                              preferred_element_type=jnp.float32)
            attn_acc = contrib if attn_acc is None else attn_acc + contrib

        attn_out = attn_acc + o_b_ref[li]
        x = layer_norm(attn_out + x, ln1_g_ref[li], ln1_b_ref[li])

        # ---- feed-forward ----
        h1 = (jnp.dot(x, ffn1_w_ref[li], preferred_element_type=jnp.float32)
              + ffn1_b_ref[li])
        # TODO(synk): HF BERT uses exact erf-GELU; tanh approximation used here.
        h1 = jax.nn.gelu(h1, approximate=True)
        h2 = (jnp.dot(h1, ffn2_w_ref[li], preferred_element_type=jnp.float32)
              + ffn2_b_ref[li])
        x = layer_norm(h2 + x, ln2_g_ref[li], ln2_b_ref[li])

    # masked_fill(~mask, 0) + sequence_output[:, REPRESENTATION, :] as a
    # selector matmul (mask value already folded into sel).
    out_ref[...] = jnp.dot(sel_ref[...], x,
                           preferred_element_type=jnp.float32).astype(out_ref.dtype)


# ----------------------------- kernel wrapper ---------------------------------
def _full_spec(shape):
    if len(shape) == 2:
        return pl.BlockSpec(shape, lambda i: (0, 0))
    return pl.BlockSpec(shape, lambda i: (0, 0, 0))


def fused_encoder(params, x_emb, attn_bias, sel):
    BT = sel.shape[0]
    args = (x_emb, attn_bias, sel,
            params["emb_ln_g"], params["emb_ln_b"],
            params["qkv_w"], params["qkv_b"],
            params["o_w"], params["o_b"],
            params["ln1_g"], params["ln1_b"],
            params["ffn1_w"], params["ffn1_b"],
            params["ffn2_w"], params["ffn2_b"],
            params["ln2_g"], params["ln2_b"])
    in_specs = [_full_spec(a.shape) for a in args]
    return pl.pallas_call(
        _fused_encoder_kernel,
        out_shape=jax.ShapeDtypeStruct((BT, HID), jnp.float32),
        grid=(1,),
        in_specs=in_specs,
        out_specs=pl.BlockSpec((BT, HID), lambda i: (0, 0)),
        compiler_params=pltpu.CompilerParams(
            dimension_semantics=("arbitrary",)),
    )(*args)


# ----------------------------- parameter init --------------------------------
def init_params(key):
    def dense(k, din, dout):
        kw, kb = jax.random.split(k)
        return (0.02 * jax.random.normal(kw, (din, dout), jnp.float32),
                0.02 * jax.random.normal(kb, (1, dout), jnp.float32))

    keys = jax.random.split(key, 3 + NLAYERS)
    params = {
        "word_emb": 0.02 * jax.random.normal(keys[0], (VOCAB, HID), jnp.float32),
        "pos_emb": 0.02 * jax.random.normal(keys[1], (MAXPOS, HID), jnp.float32),
        "type_emb": 0.02 * jax.random.normal(keys[2], (2, HID), jnp.float32),
        "emb_ln_g": jnp.ones((1, HID), jnp.float32),
        "emb_ln_b": jnp.zeros((1, HID), jnp.float32),
    }
    qkv_w, qkv_b, o_w, o_b = [], [], [], []
    ffn1_w, ffn1_b, ffn2_w, ffn2_b = [], [], [], []
    for li in range(NLAYERS):
        lk = jax.random.split(keys[3 + li], 6)
        qw, qb = dense(lk[0], HID, HID)
        kw_, kb_ = dense(lk[1], HID, HID)
        vw, vb = dense(lk[2], HID, HID)
        # Packed QKV weight: output columns ordered [Q | K | V].
        qkv_w.append(jnp.concatenate([qw, kw_, vw], axis=1))
        qkv_b.append(jnp.concatenate([qb, kb_, vb], axis=1))
        ow, ob = dense(lk[3], HID, HID)
        o_w.append(ow)
        o_b.append(ob)
        f1w, f1b = dense(lk[4], HID, FFN)
        f2w, f2b = dense(lk[5], FFN, HID)
        ffn1_w.append(f1w)
        ffn1_b.append(f1b)
        ffn2_w.append(f2w)
        ffn2_b.append(f2b)
    params.update({
        "qkv_w": jnp.stack(qkv_w), "qkv_b": jnp.stack(qkv_b),
        "o_w": jnp.stack(o_w), "o_b": jnp.stack(o_b),
        "ln1_g": jnp.ones((NLAYERS, 1, HID), jnp.float32),
        "ln1_b": jnp.zeros((NLAYERS, 1, HID), jnp.float32),
        "ffn1_w": jnp.stack(ffn1_w), "ffn1_b": jnp.stack(ffn1_b),
        "ffn2_w": jnp.stack(ffn2_w), "ffn2_b": jnp.stack(ffn2_b),
        "ln2_g": jnp.ones((NLAYERS, 1, HID), jnp.float32),
        "ln2_b": jnp.zeros((NLAYERS, 1, HID), jnp.float32),
    })
    return params


# ----------------------------- encoder forward --------------------------------
def encoder_get_representation(params, input_ids, attention_mask):
    """Runs the (batched) encoder; returns masked CLS reps [BT, HID]."""
    BT, S = input_ids.shape
    M = BT * S
    mask_f = attention_mask.astype(jnp.float32)

    # Embedding gather (plain-JAX glue); token_type_ids=None -> all zeros.
    x = (jnp.take(params["word_emb"], input_ids, axis=0)
         + params["pos_emb"][:S][None, :, :]
         + params["type_emb"][0][None, None, :]).reshape(M, HID)

    # Block-diagonal (same-batch) + padding additive attention bias [M, M].
    batch_idx = jnp.repeat(jnp.arange(BT), S)
    same_batch = batch_idx[:, None] == batch_idx[None, :]
    key_valid = (mask_f.reshape(M) > 0.5)[None, :]
    attn_bias = jnp.where(same_batch & key_valid, 0.0, NEG_INF).astype(jnp.float32)

    # CLS selector with masked_fill folded in: sel[b, b*S+REP] = mask[b, REP].
    sel = jnp.zeros((BT, M), jnp.float32)
    sel = sel.at[jnp.arange(BT), jnp.arange(BT) * S + REPRESENTATION].set(
        mask_f[:, REPRESENTATION])

    return fused_encoder(params, x, attn_bias, sel)


@jax.jit
def biencoder_forward(params, q_ids, q_attn_mask, ctx_ids, ctx_attn_mask):
    # Both encoders are built from the same checkpoint (shared weights), so the
    # two forward passes are fused into one batched pass (q || ctx).
    B = q_ids.shape[0]
    ids = jnp.concatenate([q_ids, ctx_ids], axis=0)
    mask = jnp.concatenate([q_attn_mask, ctx_attn_mask], axis=0)
    out = encoder_get_representation(params, ids, mask)
    return out[:B], out[B:]


# ----------------------------------- main -------------------------------------
if __name__ == "__main__":
    key = jax.random.PRNGKey(0)
    k_params, k_q, k_ctx = jax.random.split(key, 3)

    params = init_params(k_params)

    B, S = 2, 8
    q_ids = jax.random.randint(k_q, (B, S), 0, VOCAB, dtype=jnp.int32)
    ctx_ids = jax.random.randint(k_ctx, (B, S), 0, VOCAB, dtype=jnp.int32)
    q_attn_mask = jnp.array([[1, 1, 1, 1, 1, 1, 1, 1],
                             [1, 1, 1, 1, 1, 0, 0, 0]], dtype=jnp.int32)
    ctx_attn_mask = jnp.array([[1, 1, 1, 1, 1, 1, 0, 0],
                               [1, 1, 1, 1, 1, 1, 1, 1]], dtype=jnp.int32)

    q_out, ctx_out = biencoder_forward(params, q_ids, q_attn_mask,
                                       ctx_ids, ctx_attn_mask)
    jax.block_until_ready((q_out, ctx_out))

    assert q_out.shape == (B, HID) and ctx_out.shape == (B, HID)
    assert jnp.all(jnp.isfinite(q_out)) and jnp.all(jnp.isfinite(ctx_out))
    print("KERNEL_OK")
</pallas_src>

<mosaic_0001>
module attributes {stable_mosaic.version = 11 : i64} {
  func.func @_fused_encoder_kernel(%arg0: i32, %arg1: memref<32x32xf32, #tpu.memory_space<vmem>>, %arg2: memref<32x32xf32, #tpu.memory_space<vmem>>, %arg3: memref<4x32xf32, #tpu.memory_space<vmem>>, %arg4: memref<1x32xf32, #tpu.memory_space<vmem>>, %arg5: memref<1x32xf32, #tpu.memory_space<vmem>>, %arg6: memref<2x32x96xf32, #tpu.memory_space<vmem>>, %arg7: memref<2x1x96xf32, #tpu.memory_space<vmem>>, %arg8: memref<2x32x32xf32, #tpu.memory_space<vmem>>, %arg9: memref<2x1x32xf32, #tpu.memory_space<vmem>>, %arg10: memref<2x1x32xf32, #tpu.memory_space<vmem>>, %arg11: memref<2x1x32xf32, #tpu.memory_space<vmem>>, %arg12: memref<2x32x64xf32, #tpu.memory_space<vmem>>, %arg13: memref<2x1x64xf32, #tpu.memory_space<vmem>>, %arg14: memref<2x64x32xf32, #tpu.memory_space<vmem>>, %arg15: memref<2x1x32xf32, #tpu.memory_space<vmem>>, %arg16: memref<2x1x32xf32, #tpu.memory_space<vmem>>, %arg17: memref<2x1x32xf32, #tpu.memory_space<vmem>>, %arg18: memref<4x32xf32, #tpu.memory_space<vmem>>) attributes {dimension_semantics = [#tpu.dimension_semantics<arbitrary>], iteration_bounds = array<i64: 1>, scalar_prefetch = 0 : i64, scratch_operands = 0 : i64, tpu.core_type = #tpu.core_type<tc>, window_params = [{pipeline_mode = #tpu.pipeline_mode<synchronous>, transform_indices = @transform_0, window_bounds = array<i64: 32, 32>}, {pipeline_mode = #tpu.pipeline_mode<synchronous>, transform_indices = @transform_1, window_bounds = array<i64: 32, 32>}, {pipeline_mode = #tpu.pipeline_mode<synchronous>, transform_indices = @transform_2, window_bounds = array<i64: 4, 32>}, {pipeline_mode = #tpu.pipeline_mode<synchronous>, transform_indices = @transform_3, window_bounds = array<i64: 1, 32>}, {pipeline_mode = #tpu.pipeline_mode<synchronous>, transform_indices = @transform_4, window_bounds = array<i64: 1, 32>}, {pipeline_mode = #tpu.pipeline_mode<synchronous>, transform_indices = @transform_5, window_bounds = array<i64: 2, 32, 96>}, {pipeline_mode = #tpu.pipeline_mode<synchronous>, transform_indices = @transform_6, window_bounds = array<i64: 2, 1, 96>}, {pipeline_mode = #tpu.pipeline_mode<synchronous>, transform_indices = @transform_7, window_bounds = array<i64: 2, 32, 32>}, {pipeline_mode = #tpu.pipeline_mode<synchronous>, transform_indices = @transform_8, window_bounds = array<i64: 2, 1, 32>}, {pipeline_mode = #tpu.pipeline_mode<synchronous>, transform_indices = @transform_9, window_bounds = array<i64: 2, 1, 32>}, {pipeline_mode = #tpu.pipeline_mode<synchronous>, transform_indices = @transform_10, window_bounds = array<i64: 2, 1, 32>}, {pipeline_mode = #tpu.pipeline_mode<synchronous>, transform_indices = @transform_11, window_bounds = array<i64: 2, 32, 64>}, {pipeline_mode = #tpu.pipeline_mode<synchronous>, transform_indices = @transform_12, window_bounds = array<i64: 2, 1, 64>}, {pipeline_mode = #tpu.pipeline_mode<synchronous>, transform_indices = @transform_13, window_bounds = array<i64: 2, 64, 32>}, {pipeline_mode = #tpu.pipeline_mode<synchronous>, transform_indices = @transform_14, window_bounds = array<i64: 2, 1, 32>}, {pipeline_mode = #tpu.pipeline_mode<synchronous>, transform_indices = @transform_15, window_bounds = array<i64: 2, 1, 32>}, {pipeline_mode = #tpu.pipeline_mode<synchronous>, transform_indices = @transform_16, window_bounds = array<i64: 2, 1, 32>}, {pipeline_mode = #tpu.pipeline_mode<synchronous>, transform_indices = @transform_17, window_bounds = array<i64: 4, 32>}]} {
    %c0 = arith.constant 0 : index
    %c0_0 = arith.constant 0 : index
    %0 = vector.load %arg1[%c0, %c0_0] : memref<32x32xf32, #tpu.memory_space<vmem>>, vector<32x32xf32>
    %c0_1 = arith.constant 0 : index
    %c0_2 = arith.constant 0 : index
    %1 = vector.load %arg4[%c0_1, %c0_2] : memref<1x32xf32, #tpu.memory_space<vmem>>, vector<1x32xf32>
    %c0_3 = arith.constant 0 : index
    %c0_4 = arith.constant 0 : index
    %2 = vector.load %arg5[%c0_3, %c0_4] : memref<1x32xf32, #tpu.memory_space<vmem>>, vector<1x32xf32>
    %cst = arith.constant dense<0.000000e+00> : vector<32xf32>
    %3 = vector.multi_reduction <add>, %0, %cst [1] : vector<32x32xf32> to vector<32xf32>
    %4 = vector.shape_cast %3 : vector<32xf32> to vector<32x1xf32>
    %cst_5 = arith.constant 3.200000e+01 : f32
    %5 = vector.broadcast %cst_5 : f32 to vector<32x1xf32>
    %6 = arith.divf %4, %5 : vector<32x1xf32>
    %7 = vector.broadcast %6 : vector<32x1xf32> to vector<32x32xf32>
    %8 = arith.subf %0, %7 : vector<32x32xf32>
    %9 = arith.mulf %8, %8 : vector<32x32xf32>
    %cst_6 = arith.constant dense<0.000000e+00> : vector<32xf32>
    %10 = vector.multi_reduction <add>, %9, %cst_6 [1] : vector<32x32xf32> to vector<32xf32>
    %11 = vector.shape_cast %10 : vector<32xf32> to vector<32x1xf32>
    %cst_7 = arith.constant 3.200000e+01 : f32
    %12 = vector.broadcast %cst_7 : f32 to vector<32x1xf32>
    %13 = arith.divf %11, %12 : vector<32x1xf32>
    %cst_8 = arith.constant 9.99999996E-13 : f32
    %14 = vector.broadcast %cst_8 : f32 to vector<32x1xf32>
    %15 = arith.addf %13, %14 : vector<32x1xf32>
    %16 = math.rsqrt %15 : vector<32x1xf32>
    %17 = vector.broadcast %16 : vector<32x1xf32> to vector<32x32xf32>
    %18 = arith.mulf %8, %17 : vector<32x32xf32>
    %19 = vector.broadcast %1 : vector<1x32xf32> to vector<32x32xf32>
    %20 = arith.mulf %18, %19 : vector<32x32xf32>
    %21 = vector.broadcast %2 : vector<1x32xf32> to vector<32x32xf32>
    %22 = arith.addf %20, %21 : vector<32x32xf32>
    %c0_9 = arith.constant 0 : index
    %c0_10 = arith.constant 0 : index
    %23 = vector.load %arg2[%c0_9, %c0_10] : memref<32x32xf32, #tpu.memory_space<vmem>>, vector<32x32xf32>
    %c0_11 = arith.constant 0 : index
    %c0_12 = arith.constant 0 : index
    %c0_13 = arith.constant 0 : index
    %24 = vector.load %arg6[%c0_11, %c0_12, %c0_13] : memref<2x32x96xf32, #tpu.memory_space<vmem>>, vector<1x32x96xf32>
    %25 = vector.shape_cast %24 : vector<1x32x96xf32> to vector<32x96xf32>
    %cst_14 = arith.constant dense<0.000000e+00> : vector<32x96xf32>
    %26 = tpu.matmul %22, %25, %cst_14 {dimension_numbers = #tpu.dot_dimension_numbers<[1], [0], [0], [1], [0, 0, 1, 1], [], []>} : vector<32x32xf32>, vector<32x96xf32>, vector<32x96xf32> -> vector<32x96xf32>
    %c0_15 = arith.constant 0 : index
    %c0_16 = arith.constant 0 : index
    %c0_17 = arith.constant 0 : index
    %27 = vector.load %arg7[%c0_15, %c0_16, %c0_17] : memref<2x1x96xf32, #tpu.memory_space<vmem>>, vector<1x1x96xf32>
    %28 = vector.shape_cast %27 : vector<1x1x96xf32> to vector<1x96xf32>
    %29 = vector.broadcast %28 : vector<1x96xf32> to vector<32x96xf32>
    %30 = arith.addf %26, %29 : vector<32x96xf32>
    %c0_18 = arith.constant 0 : index
    %c0_19 = arith.constant 0 : index
    %c0_20 = arith.constant 0 : index
    %31 = vector.load %arg8[%c0_18, %c0_19, %c0_20] : memref<2x32x32xf32, #tpu.memory_space<vmem>>, vector<1x32x32xf32>
    %32 = vector.shape_cast %31 : vector<1x32x32xf32> to vector<32x32xf32>
    %33 = vector.extract_strided_slice %30 {offsets = [0, 0], sizes = [32, 16], strides = [1, 1]} : vector<32x96xf32> to vector<32x16xf32>
    %34 = vector.extract_strided_slice %30 {offsets = [0, 32], sizes = [32, 16], strides = [1, 1]} : vector<32x96xf32> to vector<32x16xf32>
    %35 = vector.extract_strided_slice %30 {offsets = [0, 64], sizes = [32, 16], strides = [1, 1]} : vector<32x96xf32> to vector<32x16xf32>
    %36 = tpu.transpose %34, [1, 0] : vector<32x16xf32> -> vector<16x32xf32>
    %cst_21 = arith.constant dense<0.000000e+00> : vector<32x32xf32>
    %37 = tpu.matmul %33, %36, %cst_21 {dimension_numbers = #tpu.dot_dimension_numbers<[1], [0], [0], [1], [0, 0, 1, 1], [], []>} : vector<32x16xf32>, vector<16x32xf32>, vector<32x32xf32> -> vector<32x32xf32>
    %cst_22 = arith.constant 2.500000e-01 : f32
    %38 = vector.broadcast %cst_22 : f32 to vector<32x32xf32>
    %39 = arith.mulf %37, %38 : vector<32x32xf32>
    %40 = arith.addf %39, %23 : vector<32x32xf32>
    %cst_23 = arith.constant dense<0xFF800000> : vector<32xf32>
    %41 = vector.multi_reduction <maximumf>, %40, %cst_23 [1] : vector<32x32xf32> to vector<32xf32>
    %42 = vector.shape_cast %41 : vector<32xf32> to vector<32x1xf32>
    %43 = vector.broadcast %42 : vector<32x1xf32> to vector<32x32xf32>
    %44 = arith.subf %40, %43 : vector<32x32xf32>
    %45 = math.exp %44 : vector<32x32xf32>
    %cst_24 = arith.constant dense<0.000000e+00> : vector<32xf32>
    %46 = vector.multi_reduction <add>, %45, %cst_24 [1] : vector<32x32xf32> to vector<32xf32>
    %47 = vector.shape_cast %46 : vector<32xf32> to vector<32x1xf32>
    %48 = tpu.reciprocal %47 {approx = true} : vector<32x1xf32> -> vector<32x1xf32>
    %49 = vector.broadcast %48 : vector<32x1xf32> to vector<32x32xf32>
    %50 = arith.mulf %45, %49 : vector<32x32xf32>
    %cst_25 = arith.constant dense<0.000000e+00> : vector<32x16xf32>
    %51 = tpu.matmul %50, %35, %cst_25 {dimension_numbers = #tpu.dot_dimension_numbers<[1], [0], [0], [1], [0, 0, 1, 1], [], []>} : vector<32x32xf32>, vector<32x16xf32>, vector<32x16xf32> -> vector<32x16xf32>
    %52 = vector.extract_strided_slice %32 {offsets = [0, 0], sizes = [16, 32], strides = [1, 1]} : vector<32x32xf32> to vector<16x32xf32>
    %cst_26 = arith.constant dense<0.000000e+00> : vector<32x32xf32>
    %53 = tpu.matmul %51, %52, %cst_26 {dimension_numbers = #tpu.dot_dimension_numbers<[1], [0], [0], [1], [0, 0, 1, 1], [], []>} : vector<32x16xf32>, vector<16x32xf32>, vector<32x32xf32> -> vector<32x32xf32>
    %54 = vector.extract_strided_slice %30 {offsets = [0, 16], sizes = [32, 16], strides = [1, 1]} : vector<32x96xf32> to vector<32x16xf32>
    %55 = vector.extract_strided_slice %30 {offsets = [0, 48], sizes = [32, 16], strides = [1, 1]} : vector<32x96xf32> to vector<32x16xf32>
    %56 = vector.extract_strided_slice %30 {offsets = [0, 80], sizes = [32, 16], strides = [1, 1]} : vector<32x96xf32> to vector<32x16xf32>
    %57 = tpu.transpose %55, [1, 0] : vector<32x16xf32> -> vector<16x32xf32>
    %cst_27 = arith.constant dense<0.000000e+00> : vector<32x32xf32>
    %58 = tpu.matmul %54, %57, %cst_27 {dimension_numbers = #tpu.dot_dimension_numbers<[1], [0], [0], [1], [0, 0, 1, 1], [], []>} : vector<32x16xf32>, vector<16x32xf32>, vector<32x32xf32> -> vector<32x32xf32>
    %cst_28 = arith.constant 2.500000e-01 : f32
    %59 = vector.broadcast %cst_28 : f32 to vector<32x32xf32>
    %60 = arith.mulf %58, %59 : vector<32x32xf32>
    %61 = arith.addf %60, %23 : vector<32x32xf32>
    %cst_29 = arith.constant dense<0xFF800000> : vector<32xf32>
    %62 = vector.multi_reduction <maximumf>, %61, %cst_29 [1] : vector<32x32xf32> to vector<32xf32>
    %63 = vector.shape_cast %62 : vector<32xf32> to vector<32x1xf32>
    %64 = vector.broadcast %63 : vector<32x1xf32> to vector<32x32xf32>
    %65 = arith.subf %61, %64 : vector<32x32xf32>
    %66 = math.exp %65 : vector<32x32xf32>
    %cst_30 = arith.constant dense<0.000000e+00> : vector<32xf32>
    %67 = vector.multi_reduction <add>, %66, %cst_30 [1] : vector<32x32xf32> to vector<32xf32>
    %68 = vector.shape_cast %67 : vector<32xf32> to vector<32x1xf32>
    %69 = tpu.reciprocal %68 {approx = true} : vector<32x1xf32> -> vector<32x1xf32>
    %70 = vector.broadcast %69 : vector<32x1xf32> to vector<32x32xf32>
    %71 = arith.mulf %66, %70 : vector<32x32xf32>
    %cst_31 = arith.constant dense<0.000000e+00> : vector<32x16xf32>
    %72 = tpu.matmul %71, %56, %cst_31 {dimension_numbers = #tpu.dot_dimension_numbers<[1], [0], [0], [1], [0, 0, 1, 1], [], []>} : vector<32x32xf32>, vector<32x16xf32>, vector<32x16xf32> -> vector<32x16xf32>
    %73 = vector.extract_strided_slice %32 {offsets = [16, 0], sizes = [16, 32], strides = [1, 1]} : vector<32x32xf32> to vector<16x32xf32>
    %cst_32 = arith.constant dense<0.000000e+00> : vector<32x32xf32>
    %74 = tpu.matmul %72, %73, %cst_32 {dimension_numbers = #tpu.dot_dimension_numbers<[1], [0], [0], [1], [0, 0, 1, 1], [], []>} : vector<32x16xf32>, vector<16x32xf32>, vector<32x32xf32> -> vector<32x32xf32>
    %75 = arith.addf %53, %74 : vector<32x32xf32>
    %c0_33 = arith.constant 0 : index
    %c0_34 = arith.constant 0 : index
    %c0_35 = arith.constant 0 : index
    %76 = vector.load %arg9[%c0_33, %c0_34, %c0_35] : memref<2x1x32xf32, #tpu.memory_space<vmem>>, vector<1x1x32xf32>
    %77 = vector.shape_cast %76 : vector<1x1x32xf32> to vector<1x32xf32>
    %78 = vector.broadcast %77 : vector<1x32xf32> to vector<32x32xf32>
    %79 = arith.addf %75, %78 : vector<32x32xf32>
    %80 = arith.addf %79, %22 : vector<32x32xf32>
    %c0_36 = arith.constant 0 : index
    %c0_37 = arith.constant 0 : index
    %c0_38 = arith.constant 0 : index
    %81 = vector.load %arg10[%c0_36, %c0_37, %c0_38] : memref<2x1x32xf32, #tpu.memory_space<vmem>>, vector<1x1x32xf32>
    %82 = vector.shape_cast %81 : vector<1x1x32xf32> to vector<1x32xf32>
    %c0_39 = arith.constant 0 : index
    %c0_40 = arith.constant 0 : index
    %c0_41 = arith.constant 0 : index
    %83 = vector.load %arg11[%c0_39, %c0_40, %c0_41] : memref<2x1x32xf32, #tpu.memory_space<vmem>>, vector<1x1x32xf32>
    %84 = vector.shape_cast %83 : vector<1x1x32xf32> to vector<1x32xf32>
    %cst_42 = arith.constant dense<0.000000e+00> : vector<32xf32>
    %85 = vector.multi_reduction <add>, %80, %cst_42 [1] : vector<32x32xf32> to vector<32xf32>
    %86 = vector.shape_cast %85 : vector<32xf32> to vector<32x1xf32>
    %cst_43 = arith.constant 3.200000e+01 : f32
    %87 = vector.broadcast %cst_43 : f32 to vector<32x1xf32>
    %88 = arith.divf %86, %87 : vector<32x1xf32>
    %89 = vector.broadcast %88 : vector<32x1xf32> to vector<32x32xf32>
    %90 = arith.subf %80, %89 : vector<32x32xf32>
    %91 = arith.mulf %90, %90 : vector<32x32xf32>
    %cst_44 = arith.constant dense<0.000000e+00> : vector<32xf32>
    %92 = vector.multi_reduction <add>, %91, %cst_44 [1] : vector<32x32xf32> to vector<32xf32>
    %93 = vector.shape_cast %92 : vector<32xf32> to vector<32x1xf32>
    %cst_45 = arith.constant 3.200000e+01 : f32
    %94 = vector.broadcast %cst_45 : f32 to vector<32x1xf32>
    %95 = arith.divf %93, %94 : vector<32x1xf32>
    %cst_46 = arith.constant 9.99999996E-13 : f32
    %96 = vector.broadcast %cst_46 : f32 to vector<32x1xf32>
    %97 = arith.addf %95, %96 : vector<32x1xf32>
    %98 = math.rsqrt %97 : vector<32x1xf32>
    %99 = vector.broadcast %98 : vector<32x1xf32> to vector<32x32xf32>
    %100 = arith.mulf %90, %99 : vector<32x32xf32>
    %101 = vector.broadcast %82 : vector<1x32xf32> to vector<32x32xf32>
    %102 = arith.mulf %100, %101 : vector<32x32xf32>
    %103 = vector.broadcast %84 : vector<1x32xf32> to vector<32x32xf32>
    %104 = arith.addf %102, %103 : vector<32x32xf32>
    %c0_47 = arith.constant 0 : index
    %c0_48 = arith.constant 0 : index
    %c0_49 = arith.constant 0 : index
    %105 = vector.load %arg12[%c0_47, %c0_48, %c0_49] : memref<2x32x64xf32, #tpu.memory_space<vmem>>, vector<1x32x64xf32>
    %106 = vector.shape_cast %105 : vector<1x32x64xf32> to vector<32x64xf32>
    %cst_50 = arith.constant dense<0.000000e+00> : vector<32x64xf32>
    %107 = tpu.matmul %104, %106, %cst_50 {dimension_numbers = #tpu.dot_dimension_numbers<[1], [0], [0], [1], [0, 0, 1, 1], [], []>} : vector<32x32xf32>, vector<32x64xf32>, vector<32x64xf32> -> vector<32x64xf32>
    %c0_51 = arith.constant 0 : index
    %c0_52 = arith.constant 0 : index
    %c0_53 = arith.constant 0 : index
    %108 = vector.load %arg13[%c0_51, %c0_52, %c0_53] : memref<2x1x64xf32, #tpu.memory_space<vmem>>, vector<1x1x64xf32>
    %109 = vector.shape_cast %108 : vector<1x1x64xf32> to vector<1x64xf32>
    %110 = vector.broadcast %109 : vector<1x64xf32> to vector<32x64xf32>
    %111 = arith.addf %107, %110 : vector<32x64xf32>
    %112 = arith.mulf %111, %111 : vector<32x64xf32>
    %113 = arith.mulf %111, %112 : vector<32x64xf32>
    %cst_54 = arith.constant 4.471500e-02 : f32
    %114 = vector.broadcast %cst_54 : f32 to vector<32x64xf32>
    %115 = arith.mulf %114, %113 : vector<32x64xf32>
    %116 = arith.addf %111, %115 : vector<32x64xf32>
    %cst_55 = arith.constant 0.797884583 : f32
    %117 = vector.broadcast %cst_55 : f32 to vector<32x64xf32>
    %118 = arith.mulf %117, %116 : vector<32x64xf32>
    %119 = math.tanh %118 : vector<32x64xf32>
    %cst_56 = arith.constant 1.000000e+00 : f32
    %120 = vector.broadcast %cst_56 : f32 to vector<32x64xf32>
    %121 = arith.addf %120, %119 : vector<32x64xf32>
    %cst_57 = arith.constant 5.000000e-01 : f32
    %122 = vector.broadcast %cst_57 : f32 to vector<32x64xf32>
    %123 = arith.mulf %122, %121 : vector<32x64xf32>
    %124 = arith.mulf %111, %123 : vector<32x64xf32>
    %c0_58 = arith.constant 0 : index
    %c0_59 = arith.constant 0 : index
    %c0_60 = arith.constant 0 : index
    %125 = vector.load %arg14[%c0_58, %c0_59, %c0_60] : memref<2x64x32xf32, #tpu.memory_space<vmem>>, vector<1x64x32xf32>
    %126 = vector.shape_cast %125 : vector<1x64x32xf32> to vector<64x32xf32>
    %cst_61 = arith.constant dense<0.000000e+00> : vector<32x32xf32>
    %127 = tpu.matmul %124, %126, %cst_61 {dimension_numbers = #tpu.dot_dimension_numbers<[1], [0], [0], [1], [0, 0, 1, 1], [], []>} : vector<32x64xf32>, vector<64x32xf32>, vector<32x32xf32> -> vector<32x32xf32>
    %c0_62 = arith.constant 0 : index
    %c0_63 = arith.constant 0 : index
    %c0_64 = arith.constant 0 : index
    %128 = vector.load %arg15[%c0_62, %c0_63, %c0_64] : memref<2x1x32xf32, #tpu.memory_space<vmem>>, vector<1x1x32xf32>
    %129 = vector.shape_cast %128 : vector<1x1x32xf32> to vector<1x32xf32>
    %130 = vector.broadcast %129 : vector<1x32xf32> to vector<32x32xf32>
    %131 = arith.addf %127, %130 : vector<32x32xf32>
    %132 = arith.addf %131, %104 : vector<32x32xf32>
    %c0_65 = arith.constant 0 : index
    %c0_66 = arith.constant 0 : index
    %c0_67 = arith.constant 0 : index
    %133 = vector.load %arg16[%c0_65, %c0_66, %c0_67] : memref<2x1x32xf32, #tpu.memory_space<vmem>>, vector<1x1x32xf32>
    %134 = vector.shape_cast %133 : vector<1x1x32xf32> to vector<1x32xf32>
    %c0_68 = arith.constant 0 : index
    %c0_69 = arith.constant 0 : index
    %c0_70 = arith.constant 0 : index
    %135 = vector.load %arg17[%c0_68, %c0_69, %c0_70] : memref<2x1x32xf32, #tpu.memory_space<vmem>>, vector<1x1x32xf32>
    %136 = vector.shape_cast %135 : vector<1x1x32xf32> to vector<1x32xf32>
    %cst_71 = arith.constant dense<0.000000e+00> : vector<32xf32>
    %137 = vector.multi_reduction <add>, %132, %cst_71 [1] : vector<32x32xf32> to vector<32xf32>
    %138 = vector.shape_cast %137 : vector<32xf32> to vector<32x1xf32>
    %cst_72 = arith.constant 3.200000e+01 : f32
    %139 = vector.broadcast %cst_72 : f32 to vector<32x1xf32>
    %140 = arith.divf %138, %139 : vector<32x1xf32>
    %141 = vector.broadcast %140 : vector<32x1xf32> to vector<32x32xf32>
    %142 = arith.subf %132, %141 : vector<32x32xf32>
    %143 = arith.mulf %142, %142 : vector<32x32xf32>
    %cst_73 = arith.constant dense<0.000000e+00> : vector<32xf32>
    %144 = vector.multi_reduction <add>, %143, %cst_73 [1] : vector<32x32xf32> to vector<32xf32>
    %145 = vector.shape_cast %144 : vector<32xf32> to vector<32x1xf32>
    %cst_74 = arith.constant 3.200000e+01 : f32
    %146 = vector.broadcast %cst_74 : f32 to vector<32x1xf32>
    %147 = arith.divf %145, %146 : vector<32x1xf32>
    %cst_75 = arith.constant 9.99999996E-13 : f32
    %148 = vector.broadcast %cst_75 : f32 to vector<32x1xf32>
    %149 = arith.addf %147, %148 : vector<32x1xf32>
    %150 = math.rsqrt %149 : vector<32x1xf32>
    %151 = vector.broadcast %150 : vector<32x1xf32> to vector<32x32xf32>
    %152 = arith.mulf %142, %151 : vector<32x32xf32>
    %153 = vector.broadcast %134 : vector<1x32xf32> to vector<32x32xf32>
    %154 = arith.mulf %152, %153 : vector<32x32xf32>
    %155 = vector.broadcast %136 : vector<1x32xf32> to vector<32x32xf32>
    %156 = arith.addf %154, %155 : vector<32x32xf32>
    %c1 = arith.constant 1 : index
    %c0_76 = arith.constant 0 : index
    %c0_77 = arith.constant 0 : index
    %157 = vector.load %arg6[%c1, %c0_76, %c0_77] : memref<2x32x96xf32, #tpu.memory_space<vmem>>, vector<1x32x96xf32>
    %158 = vector.shape_cast %157 : vector<1x32x96xf32> to vector<32x96xf32>
    %cst_78 = arith.constant dense<0.000000e+00> : vector<32x96xf32>
    %159 = tpu.matmul %156, %158, %cst_78 {dimension_numbers = #tpu.dot_dimension_numbers<[1], [0], [0], [1], [0, 0, 1, 1], [], []>} : vector<32x32xf32>, vector<32x96xf32>, vector<32x96xf32> -> vector<32x96xf32>
    %c1_79 = arith.constant 1 : index
    %c0_80 = arith.constant 0 : index
    %c0_81 = arith.constant 0 : index
    %160 = vector.load %arg7[%c1_79, %c0_80, %c0_81] : memref<2x1x96xf32, #tpu.memory_space<vmem>>, vector<1x1x96xf32>
    %161 = vector.shape_cast %160 : vector<1x1x96xf32> to vector<1x96xf32>
    %162 = vector.broadcast %161 : vector<1x96xf32> to vector<32x96xf32>
    %163 = arith.addf %159, %162 : vector<32x96xf32>
    %c1_82 = arith.constant 1 : index
    %c0_83 = arith.constant 0 : index
    %c0_84 = arith.constant 0 : index
    %164 = vector.load %arg8[%c1_82, %c0_83, %c0_84] : memref<2x32x32xf32, #tpu.memory_space<vmem>>, vector<1x32x32xf32>
    %165 = vector.shape_cast %164 : vector<1x32x32xf32> to vector<32x32xf32>
    %166 = vector.extract_strided_slice %163 {offsets = [0, 0], sizes = [32, 16], strides = [1, 1]} : vector<32x96xf32> to vector<32x16xf32>
    %167 = vector.extract_strided_slice %163 {offsets = [0, 32], sizes = [32, 16], strides = [1, 1]} : vector<32x96xf32> to vector<32x16xf32>
    %168 = vector.extract_strided_slice %163 {offsets = [0, 64], sizes = [32, 16], strides = [1, 1]} : vector<32x96xf32> to vector<32x16xf32>
    %169 = tpu.transpose %167, [1, 0] : vector<32x16xf32> -> vector<16x32xf32>
    %cst_85 = arith.constant dense<0.000000e+00> : vector<32x32xf32>
    %170 = tpu.matmul %166, %169, %cst_85 {dimension_numbers = #tpu.dot_dimension_numbers<[1], [0], [0], [1], [0, 0, 1, 1], [], []>} : vector<32x16xf32>, vector<16x32xf32>, vector<32x32xf32> -> vector<32x32xf32>
    %cst_86 = arith.constant 2.500000e-01 : f32
    %171 = vector.broadcast %cst_86 : f32 to vector<32x32xf32>
    %172 = arith.mulf %170, %171 : vector<32x32xf32>
    %173 = arith.addf %172, %23 : vector<32x32xf32>
    %cst_87 = arith.constant dense<0xFF800000> : vector<32xf32>
    %174 = vector.multi_reduction <maximumf>, %173, %cst_87 [1] : vector<32x32xf32> to vector<32xf32>
    %175 = vector.shape_cast %174 : vector<32xf32> to vector<32x1xf32>
    %176 = vector.broadcast %175 : vector<32x1xf32> to vector<32x32xf32>
    %177 = arith.subf %173, %176 : vector<32x32xf32>
    %178 = math.exp %177 : vector<32x32xf32>
    %cst_88 = arith.constant dense<0.000000e+00> : vector<32xf32>
    %179 = vector.multi_reduction <add>, %178, %cst_88 [1] : vector<32x32xf32> to vector<32xf32>
    %180 = vector.shape_cast %179 : vector<32xf32> to vector<32x1xf32>
    %181 = tpu.reciprocal %180 {approx = true} : vector<32x1xf32> -> vector<32x1xf32>
    %182 = vector.broadcast %181 : vector<32x1xf32> to vector<32x32xf32>
    %183 = arith.mulf %178, %182 : vector<32x32xf32>
    %cst_89 = arith.constant dense<0.000000e+00> : vector<32x16xf32>
    %184 = tpu.matmul %183, %168, %cst_89 {dimension_numbers = #tpu.dot_dimension_numbers<[1], [0], [0], [1], [0, 0, 1, 1], [], []>} : vector<32x32xf32>, vector<32x16xf32>, vector<32x16xf32> -> vector<32x16xf32>
    %185 = vector.extract_strided_slice %165 {offsets = [0, 0], sizes = [16, 32], strides = [1, 1]} : vector<32x32xf32> to vector<16x32xf32>
    %cst_90 = arith.constant dense<0.000000e+00> : vector<32x32xf32>
    %186 = tpu.matmul %184, %185, %cst_90 {dimension_numbers = #tpu.dot_dimension_numbers<[1], [0], [0], [1], [0, 0, 1, 1], [], []>} : vector<32x16xf32>, vector<16x32xf32>, vector<32x32xf32> -> vector<32x32xf32>
    %187 = vector.extract_strided_slice %163 {offsets = [0, 16], sizes = [32, 16], strides = [1, 1]} : vector<32x96xf32> to vector<32x16xf32>
    %188 = vector.extract_strided_slice %163 {offsets = [0, 48], sizes = [32, 16], strides = [1, 1]} : vector<32x96xf32> to vector<32x16xf32>
    %189 = vector.extract_strided_slice %163 {offsets = [0, 80], sizes = [32, 16], strides = [1, 1]} : vector<32x96xf32> to vector<32x16xf32>
    %190 = tpu.transpose %188, [1, 0] : vector<32x16xf32> -> vector<16x32xf32>
    %cst_91 = arith.constant dense<0.000000e+00> : vector<32x32xf32>
    %191 = tpu.matmul %187, %190, %cst_91 {dimension_numbers = #tpu.dot_dimension_numbers<[1], [0], [0], [1], [0, 0, 1, 1], [], []>} : vector<32x16xf32>, vector<16x32xf32>, vector<32x32xf32> -> vector<32x32xf32>
    %cst_92 = arith.constant 2.500000e-01 : f32
    %192 = vector.broadcast %cst_92 : f32 to vector<32x32xf32>
    %193 = arith.mulf %191, %192 : vector<32x32xf32>
    %194 = arith.addf %193, %23 : vector<32x32xf32>
    %cst_93 = arith.constant dense<0xFF800000> : vector<32xf32>
    %195 = vector.multi_reduction <maximumf>, %194, %cst_93 [1] : vector<32x32xf32> to vector<32xf32>
    %196 = vector.shape_cast %195 : vector<32xf32> to vector<32x1xf32>
    %197 = vector.broadcast %196 : vector<32x1xf32> to vector<32x32xf32>
    %198 = arith.subf %194, %197 : vector<32x32xf32>
    %199 = math.exp %198 : vector<32x32xf32>
    %cst_94 = arith.constant dense<0.000000e+00> : vector<32xf32>
    %200 = vector.multi_reduction <add>, %199, %cst_94 [1] : vector<32x32xf32> to vector<32xf32>
    %201 = vector.shape_cast %200 : vector<32xf32> to vector<32x1xf32>
    %202 = tpu.reciprocal %201 {approx = true} : vector<32x1xf32> -> vector<32x1xf32>
    %203 = vector.broadcast %202 : vector<32x1xf32> to vector<32x32xf32>
    %204 = arith.mulf %199, %203 : vector<32x32xf32>
    %cst_95 = arith.constant dense<0.000000e+00> : vector<32x16xf32>
    %205 = tpu.matmul %204, %189, %cst_95 {dimension_numbers = #tpu.dot_dimension_numbers<[1], [0], [0], [1], [0, 0, 1, 1], [], []>} : vector<32x32xf32>, vector<32x16xf32>, vector<32x16xf32> -> vector<32x16xf32>
    %206 = vector.extract_strided_slice %165 {offsets = [16, 0], sizes = [16, 32], strides = [1, 1]} : vector<32x32xf32> to vector<16x32xf32>
    %cst_96 = arith.constant dense<0.000000e+00> : vector<32x32xf32>
    %207 = tpu.matmul %205, %206, %cst_96 {dimension_numbers = #tpu.dot_dimension_numbers<[1], [0], [0], [1], [0, 0, 1, 1], [], []>} : vector<32x16xf32>, vector<16x32xf32>, vector<32x32xf32> -> vector<32x32xf32>
    %208 = arith.addf %186, %207 : vector<32x32xf32>
    %c1_97 = arith.constant 1 : index
    %c0_98 = arith.constant 0 : index
    %c0_99 = arith.constant 0 : index
    %209 = vector.load %arg9[%c1_97, %c0_98, %c0_99] : memref<2x1x32xf32, #tpu.memory_space<vmem>>, vector<1x1x32xf32>
    %210 = vector.shape_cast %209 : vector<1x1x32xf32> to vector<1x32xf32>
    %211 = vector.broadcast %210 : vector<1x32xf32> to vector<32x32xf32>
    %212 = arith.addf %208, %211 : vector<32x32xf32>
    %213 = arith.addf %212, %156 : vector<32x32xf32>
    %c1_100 = arith.constant 1 : index
    %c0_101 = arith.constant 0 : index
    %c0_102 = arith.constant 0 : index
    %214 = vector.load %arg10[%c1_100, %c0_101, %c0_102] : memref<2x1x32xf32, #tpu.memory_space<vmem>>, vector<1x1x32xf32>
    %215 = vector.shape_cast %214 : vector<1x1x32xf32> to vector<1x32xf32>
    %c1_103 = arith.constant 1 : index
    %c0_104 = arith.constant 0 : index
    %c0_105 = arith.constant 0 : index
    %216 = vector.load %arg11[%c1_103, %c0_104, %c0_105] : memref<2x1x32xf32, #tpu.memory_space<vmem>>, vector<1x1x32xf32>
    %217 = vector.shape_cast %216 : vector<1x1x32xf32> to vector<1x32xf32>
    %cst_106 = arith.constant dense<0.000000e+00> : vector<32xf32>
    %218 = vector.multi_reduction <add>, %213, %cst_106 [1] : vector<32x32xf32> to vector<32xf32>
    %219 = vector.shape_cast %218 : vector<32xf32> to vector<32x1xf32>
    %cst_107 = arith.constant 3.200000e+01 : f32
    %220 = vector.broadcast %cst_107 : f32 to vector<32x1xf32>
    %221 = arith.divf %219, %220 : vector<32x1xf32>
    %222 = vector.broadcast %221 : vector<32x1xf32> to vector<32x32xf32>
    %223 = arith.subf %213, %222 : vector<32x32xf32>
    %224 = arith.mulf %223, %223 : vector<32x32xf32>
    %cst_108 = arith.constant dense<0.000000e+00> : vector<32xf32>
    %225 = vector.multi_reduction <add>, %224, %cst_108 [1] : vector<32x32xf32> to vector<32xf32>
    %226 = vector.shape_cast %225 : vector<32xf32> to vector<32x1xf32>
    %cst_109 = arith.constant 3.200000e+01 : f32
    %227 = vector.broadcast %cst_109 : f32 to vector<32x1xf32>
    %228 = arith.divf %226, %227 : vector<32x1xf32>
    %cst_110 = arith.constant 9.99999996E-13 : f32
    %229 = vector.broadcast %cst_110 : f32 to vector<32x1xf32>
    %230 = arith.addf %228, %229 : vector<32x1xf32>
    %231 = math.rsqrt %230 : vector<32x1xf32>
    %232 = vector.broadcast %231 : vector<32x1xf32> to vector<32x32xf32>
    %233 = arith.mulf %223, %232 : vector<32x32xf32>
    %234 = vector.broadcast %215 : vector<1x32xf32> to vector<32x32xf32>
    %235 = arith.mulf %233, %234 : vector<32x32xf32>
    %236 = vector.broadcast %217 : vector<1x32xf32> to vector<32x32xf32>
    %237 = arith.addf %235, %236 : vector<32x32xf32>
    %c1_111 = arith.constant 1 : index
    %c0_112 = arith.constant 0 : index
    %c0_113 = arith.constant 0 : index
    %238 = vector.load %arg12[%c1_111, %c0_112, %c0_113] : memref<2x32x64xf32, #tpu.memory_space<vmem>>, vector<1x32x64xf32>
    %239 = vector.shape_cast %238 : vector<1x32x64xf32> to vector<32x64xf32>
    %cst_114 = arith.constant dense<0.000000e+00> : vector<32x64xf32>
    %240 = tpu.matmul %237, %239, %cst_114 {dimension_numbers = #tpu.dot_dimension_numbers<[1], [0], [0], [1], [0, 0, 1, 1], [], []>} : vector<32x32xf32>, vector<32x64xf32>, vector<32x64xf32> -> vector<32x64xf32>
    %c1_115 = arith.constant 1 : index
    %c0_116 = arith.constant 0 : index
    %c0_117 = arith.constant 0 : index
    %241 = vector.load %arg13[%c1_115, %c0_116, %c0_117] : memref<2x1x64xf32, #tpu.memory_space<vmem>>, vector<1x1x64xf32>
    %242 = vector.shape_cast %241 : vector<1x1x64xf32> to vector<1x64xf32>
    %243 = vector.broadcast %242 : vector<1x64xf32> to vector<32x64xf32>
    %244 = arith.addf %240, %243 : vector<32x64xf32>
    %245 = arith.mulf %244, %244 : vector<32x64xf32>
    %246 = arith.mulf %244, %245 : vector<32x64xf32>
    %cst_118 = arith.constant 4.471500e-02 : f32
    %247 = vector.broadcast %cst_118 : f32 to vector<32x64xf32>
    %248 = arith.mulf %247, %246 : vector<32x64xf32>
    %249 = arith.addf %244, %248 : vector<32x64xf32>
    %cst_119 = arith.constant 0.797884583 : f32
    %250 = vector.broadcast %cst_119 : f32 to vector<32x64xf32>
    %251 = arith.mulf %250, %249 : vector<32x64xf32>
    %252 = math.tanh %251 : vector<32x64xf32>
    %cst_120 = arith.constant 1.000000e+00 : f32
    %253 = vector.broadcast %cst_120 : f32 to vector<32x64xf32>
    %254 = arith.addf %253, %252 : vector<32x64xf32>
    %cst_121 = arith.constant 5.000000e-01 : f32
    %255 = vector.broadcast %cst_121 : f32 to vector<32x64xf32>
    %256 = arith.mulf %255, %254 : vector<32x64xf32>
    %257 = arith.mulf %244, %256 : vector<32x64xf32>
    %c1_122 = arith.constant 1 : index
    %c0_123 = arith.constant 0 : index
    %c0_124 = arith.constant 0 : index
    %258 = vector.load %arg14[%c1_122, %c0_123, %c0_124] : memref<2x64x32xf32, #tpu.memory_space<vmem>>, vector<1x64x32xf32>
    %259 = vector.shape_cast %258 : vector<1x64x32xf32> to vector<64x32xf32>
    %cst_125 = arith.constant dense<0.000000e+00> : vector<32x32xf32>
    %260 = tpu.matmul %257, %259, %cst_125 {dimension_numbers = #tpu.dot_dimension_numbers<[1], [0], [0], [1], [0, 0, 1, 1], [], []>} : vector<32x64xf32>, vector<64x32xf32>, vector<32x32xf32> -> vector<32x32xf32>
    %c1_126 = arith.constant 1 : index
    %c0_127 = arith.constant 0 : index
    %c0_128 = arith.constant 0 : index
    %261 = vector.load %arg15[%c1_126, %c0_127, %c0_128] : memref<2x1x32xf32, #tpu.memory_space<vmem>>, vector<1x1x32xf32>
    %262 = vector.shape_cast %261 : vector<1x1x32xf32> to vector<1x32xf32>
    %263 = vector.broadcast %262 : vector<1x32xf32> to vector<32x32xf32>
    %264 = arith.addf %260, %263 : vector<32x32xf32>
    %265 = arith.addf %264, %237 : vector<32x32xf32>
    %c1_129 = arith.constant 1 : index
    %c0_130 = arith.constant 0 : index
    %c0_131 = arith.constant 0 : index
    %266 = vector.load %arg16[%c1_129, %c0_130, %c0_131] : memref<2x1x32xf32, #tpu.memory_space<vmem>>, vector<1x1x32xf32>
    %267 = vector.shape_cast %266 : vector<1x1x32xf32> to vector<1x32xf32>
    %c1_132 = arith.constant 1 : index
    %c0_133 = arith.constant 0 : index
    %c0_134 = arith.constant 0 : index
    %268 = vector.load %arg17[%c1_132, %c0_133, %c0_134] : memref<2x1x32xf32, #tpu.memory_space<vmem>>, vector<1x1x32xf32>
    %269 = vector.shape_cast %268 : vector<1x1x32xf32> to vector<1x32xf32>
    %cst_135 = arith.constant dense<0.000000e+00> : vector<32xf32>
    %270 = vector.multi_reduction <add>, %265, %cst_135 [1] : vector<32x32xf32> to vector<32xf32>
    %271 = vector.shape_cast %270 : vector<32xf32> to vector<32x1xf32>
    %cst_136 = arith.constant 3.200000e+01 : f32
    %272 = vector.broadcast %cst_136 : f32 to vector<32x1xf32>
    %273 = arith.divf %271, %272 : vector<32x1xf32>
    %274 = vector.broadcast %273 : vector<32x1xf32> to vector<32x32xf32>
    %275 = arith.subf %265, %274 : vector<32x32xf32>
    %276 = arith.mulf %275, %275 : vector<32x32xf32>
    %cst_137 = arith.constant dense<0.000000e+00> : vector<32xf32>
    %277 = vector.multi_reduction <add>, %276, %cst_137 [1] : vector<32x32xf32> to vector<32xf32>
    %278 = vector.shape_cast %277 : vector<32xf32> to vector<32x1xf32>
    %cst_138 = arith.constant 3.200000e+01 : f32
    %279 = vector.broadcast %cst_138 : f32 to vector<32x1xf32>
    %280 = arith.divf %278, %279 : vector<32x1xf32>
    %cst_139 = arith.constant 9.99999996E-13 : f32
    %281 = vector.broadcast %cst_139 : f32 to vector<32x1xf32>
    %282 = arith.addf %280, %281 : vector<32x1xf32>
    %283 = math.rsqrt %282 : vector<32x1xf32>
    %284 = vector.broadcast %283 : vector<32x1xf32> to vector<32x32xf32>
    %285 = arith.mulf %275, %284 : vector<32x32xf32>
    %286 = vector.broadcast %267 : vector<1x32xf32> to vector<32x32xf32>
    %287 = arith.mulf %285, %286 : vector<32x32xf32>
    %288 = vector.broadcast %269 : vector<1x32xf32> to vector<32x32xf32>
    %289 = arith.addf %287, %288 : vector<32x32xf32>
    %c0_140 = arith.constant 0 : index
    %c0_141 = arith.constant 0 : index
    %290 = vector.load %arg3[%c0_140, %c0_141] : memref<4x32xf32, #tpu.memory_space<vmem>>, vector<4x32xf32>
    %cst_142 = arith.constant dense<0.000000e+00> : vector<4x32xf32>
    %291 = tpu.matmul %290, %289, %cst_142 {dimension_numbers = #tpu.dot_dimension_numbers<[1], [0], [0], [1], [0, 0, 1, 1], [], []>} : vector<4x32xf32>, vector<32x32xf32>, vector<4x32xf32> -> vector<4x32xf32>
    %c0_143 = arith.constant 0 : index
    %c0_144 = arith.constant 0 : index
    %292 = vector.load %arg18[%c0_143, %c0_144] : memref<4x32xf32, #tpu.memory_space<vmem>>, vector<4x32xf32>
    tpu.vector_store %arg18[%c0_143, %c0_144], %291 {strides = array<i32>} : memref<4x32xf32, #tpu.memory_space<vmem>>, vector<4x32xf32>,
    return
  }
  func.func @transform_0(%arg0: i32) -> (i32, i32) {
    %c0_i32 = arith.constant 0 : i32
    %c0_i32_0 = arith.constant 0 : i32
    %c0_i32_1 = arith.constant 0 : i32
    return %c0_i32, %c0_i32_0 : i32, i32
  }
  func.func @transform_1(%arg0: i32) -> (i32, i32) {
    %c0_i32 = arith.constant 0 : i32
    %c0_i32_0 = arith.constant 0 : i32
    %c0_i32_1 = arith.constant 0 : i32
    return %c0_i32, %c0_i32_0 : i32, i32
  }
  func.func @transform_2(%arg0: i32) -> (i32, i32) {
    %c0_i32 = arith.constant 0 : i32
    %c0_i32_0 = arith.constant 0 : i32
    %c0_i32_1 = arith.constant 0 : i32
    return %c0_i32, %c0_i32_0 : i32, i32
  }
  func.func @transform_3(%arg0: i32) -> (i32, i32) {
    %c0_i32 = arith.constant 0 : i32
    %c0_i32_0 = arith.constant 0 : i32
    %c0_i32_1 = arith.constant 0 : i32
    return %c0_i32, %c0_i32_0 : i32, i32
  }
  func.func @transform_4(%arg0: i32) -> (i32, i32) {
    %c0_i32 = arith.constant 0 : i32
    %c0_i32_0 = arith.constant 0 : i32
    %c0_i32_1 = arith.constant 0 : i32
    return %c0_i32, %c0_i32_0 : i32, i32
  }
  func.func @transform_5(%arg0: i32) -> (i32, i32, i32) {
    %c0_i32 = arith.constant 0 : i32
    %c0_i32_0 = arith.constant 0 : i32
    %c0_i32_1 = arith.constant 0 : i32
    %c0_i32_2 = arith.constant 0 : i32
    return %c0_i32, %c0_i32_0, %c0_i32_1 : i32, i32, i32
  }
  func.func @transform_6(%arg0: i32) -> (i32, i32, i32) {
    %c0_i32 = arith.constant 0 : i32
    %c0_i32_0 = arith.constant 0 : i32
    %c0_i32_1 = arith.constant 0 : i32
    %c0_i32_2 = arith.constant 0 : i32
    return %c0_i32, %c0_i32_0, %c0_i32_1 : i32, i32, i32
  }
  func.func @transform_7(%arg0: i32) -> (i32, i32, i32) {
    %c0_i32 = arith.constant 0 : i32
    %c0_i32_0 = arith.constant 0 : i32
    %c0_i32_1 = arith.constant 0 : i32
    %c0_i32_2 = arith.constant 0 : i32
    return %c0_i32, %c0_i32_0, %c0_i32_1 : i32, i32, i32
  }
  func.func @transform_8(%arg0: i32) -> (i32, i32, i32) {
    %c0_i32 = arith.constant 0 : i32
    %c0_i32_0 = arith.constant 0 : i32
    %c0_i32_1 = arith.constant 0 : i32
    %c0_i32_2 = arith.constant 0 : i32
    return %c0_i32, %c0_i32_0, %c0_i32_1 : i32, i32, i32
  }
  func.func @transform_9(%arg0: i32) -> (i32, i32, i32) {
    %c0_i32 = arith.constant 0 : i32
    %c0_i32_0 = arith.constant 0 : i32
    %c0_i32_1 = arith.constant 0 : i32
    %c0_i32_2 = arith.constant 0 : i32
    return %c0_i32, %c0_i32_0, %c0_i32_1 : i32, i32, i32
  }
  func.func @transform_10(%arg0: i32) -> (i32, i32, i32) {
    %c0_i32 = arith.constant 0 : i32
    %c0_i32_0 = arith.constant 0 : i32
    %c0_i32_1 = arith.constant 0 : i32
    %c0_i32_2 = arith.constant 0 : i32
    return %c0_i32, %c0_i32_0, %c0_i32_1 : i32, i32, i32
  }
  func.func @transform_11(%arg0: i32) -> (i32, i32, i32) {
    %c0_i32 = arith.constant 0 : i32
    %c0_i32_0 = arith.constant 0 : i32
    %c0_i32_1 = arith.constant 0 : i32
    %c0_i32_2 = arith.constant 0 : i32
    return %c0_i32, %c0_i32_0, %c0_i32_1 : i32, i32, i32
  }
  func.func @transform_12(%arg0: i32) -> (i32, i32, i32) {
    %c0_i32 = arith.constant 0 : i32
    %c0_i32_0 = arith.constant 0 : i32
    %c0_i32_1 = arith.constant 0 : i32
    %c0_i32_2 = arith.constant 0 : i32
    return %c0_i32, %c0_i32_0, %c0_i32_1 : i32, i32, i32
  }
  func.func @transform_13(%arg0: i32) -> (i32, i32, i32) {
    %c0_i32 = arith.constant 0 : i32
    %c0_i32_0 = arith.constant 0 : i32
    %c0_i32_1 = arith.constant 0 : i32
    %c0_i32_2 = arith.constant 0 : i32
    return %c0_i32, %c0_i32_0, %c0_i32_1 : i32, i32, i32
  }
  func.func @transform_14(%arg0: i32) -> (i32, i32, i32) {
    %c0_i32 = arith.constant 0 : i32
    %c0_i32_0 = arith.constant 0 : i32
    %c0_i32_1 = arith.constant 0 : i32
    %c0_i32_2 = arith.constant 0 : i32
    return %c0_i32, %c0_i32_0, %c0_i32_1 : i32, i32, i32
  }
  func.func @transform_15(%arg0: i32) -> (i32, i32, i32) {
    %c0_i32 = arith.constant 0 : i32
    %c0_i32_0 = arith.constant 0 : i32
    %c0_i32_1 = arith.constant 0 : i32
    %c0_i32_2 = arith.constant 0 : i32
    return %c0_i32, %c0_i32_0, %c0_i32_1 : i32, i32, i32
  }
  func.func @transform_16(%arg0: i32) -> (i32, i32, i32) {
    %c0_i32 = arith.constant 0 : i32
    %c0_i32_0 = arith.constant 0 : i32
    %c0_i32_1 = arith.constant 0 : i32
    %c0_i32_2 = arith.constant 0 : i32
    return %c0_i32, %c0_i32_0, %c0_i32_1 : i32, i32, i32
  }
  func.func @transform_17(%arg0: i32) -> (i32, i32) {
    %c0_i32 = arith.constant 0 : i32
    %c0_i32_0 = arith.constant 0 : i32
    %c0_i32_1 = arith.constant 0 : i32
    return %c0_i32, %c0_i32_0 : i32, i32
  }
}

</mosaic_0001>

<bundles_post_ra>
// kernel: biencoder_forward.1
= control target key start
LH: loop header
LB: loop body
LE: loop exit
PB: predicated region body
PF: predicated region fallthrough
CT: control target
= control target key end

     0   :  { %vm62_vm0 = vcmask 261120   ;;  %vm264_vm1 = vcmask 130048   ;;  %s3474_s30 = smov 96   ;;  %s3476_s27 = smov 80   ;;  %vm1247_vm2 = vcmask 523264   ;;  %vm3480_vm3 = vmmov 0   ;;  %s4164_s0 = inlined_call_operand.vmem [shape: f32[32,32], index: 0, kind: input, shape index: {}]   ;;  %s4165_s5 = inlined_call_operand.vmem [shape: f32[2,32,96], index: 5, kind: input, shape index: {}]   ;;  %s4166_s3 = inlined_call_operand.vmem [shape: f32[1,32], index: 3, kind: input, shape index: {}]   ;;  %s4167_s4 = inlined_call_operand.vmem [shape: f32[1,32], index: 4, kind: input, shape index: {}]   ;;  %s4168_s6 = inlined_call_operand.vmem [shape: f32[2,1,96], index: 6, kind: input, shape index: {}]   ;;  %s4169_s1 = inlined_call_operand.vmem [shape: f32[32,32], index: 1, kind: input, shape index: {}]   ;;  %s4170_s7 = inlined_call_operand.vmem [shape: f32[2,32,32], index: 7, kind: input, shape index: {}]   ;;  %s4171_s8 = inlined_call_operand.vmem [shape: f32[2,1,32], index: 8, kind: input, shape index: {}]   ;;  %s4172_s11 = inlined_call_operand.vmem [shape: f32[2,32,64], index: 11, kind: input, shape index: {}]   ;;  %s4173_s9 = inlined_call_operand.vmem [shape: f32[2,1,32], index: 9, kind: input, shape index: {}]   ;;  %s4174_s10 = inlined_call_operand.vmem [shape: f32[2,1,32], index: 10, kind: input, shape index: {}]   ;;  %s4175_s13 = inlined_call_operand.vmem [shape: f32[2,64,32], index: 13, kind: input, shape index: {}]   ;;  %s4176_s12 = inlined_call_operand.vmem [shape: f32[2,1,64], index: 12, kind: input, shape index: {}]   ;;  %s4177_s14 = inlined_call_operand.vmem [shape: f32[2,1,32], index: 14, kind: input, shape index: {}]   ;;  %s4178_s15 = inlined_call_operand.vmem [shape: f32[2,1,32], index: 15, kind: input, shape index: {}]   ;;  %s4179_s16 = inlined_call_operand.vmem [shape: f32[2,1,32], index: 16, kind: input, shape index: {}]   ;;  %s4180_s2 = inlined_call_operand.vmem [shape: f32[4,32], index: 2, kind: input, shape index: {}]   ;;  %s4181_s17 = inlined_call_operand.vmem [shape: f32[4,32], index: 17, kind: output, shape index: {}]  }
   0x1   :  { %4184 = sst [smem:[#allocation2_spill]] %s4164_s0  ;;  %v2796_v45 = vld [vmem:[%s4166_s3] ss:$0 sm:$0xff]  ;;  %s3477_s28 = smov 112   ;;  %vm2790_vm4 = vcmask 257024  }
   0x2   :  { %4185 = sst [smem:[#allocation3_spill]] %s4165_s5  ;;  %v2797_v47 = vld [vmem:[%s4167_s4] ss:$0 sm:$0xff]  ;;  %s3478_s18 = smov 48  }
   0x3   :  { %s4186_s26 = sld [smem:[#allocation2_spill]]  ;;  %v2798_v63 = vld [vmem:[%s4168_s6] ss:$0 sm:$0xff] }
   0x4   :  { %s4187_s20 = sld [smem:[#allocation3_spill]] }
   0x9   :  { %v56_v0 = vld [vmem:[%s4186_s26] sm:$0xff]  ;;  %v58_v1 = vld [vmem:[%s4186_s26 + $0x10] sm:$0xff]  ;;  %v57_v2 = vld [vmem:[%s4186_s26 + $0x8] sm:$0xff] }
   0xa   :  { %v63_v3 = vsel %vm62_vm0, %v56_v0, 0.0  ;;  %v69_v4 = vsel %vm62_vm0, %v58_v1, 0.0  ;;  %v59_v5 = vld [vmem:[%s4186_s26 + $0x18] sm:$0xff]  ;;  %v66_v6 = vsel %vm62_vm0, %v57_v2, 0.0  ;;  %v142_v29 = vld [vmem:[%s4187_s20 + $0x10] sm:$0xff]  ;;  %v141_v30 = vld [vmem:[%s4187_s20 + $0x8] sm:$0xff] }
   0xb   :  { %64 = vadd.xlane.f32.xlu0 %v63_v3  ;;  %70 = vadd.xlane.f32.xlu1 %v69_v4  ;;  %v72_v7 = vsel %vm62_vm0, %v59_v5, 0.0  ;;  %v143_v28 = vld [vmem:[%s4187_s20 + $0x18] sm:$0xff]  ;;  %v140_v31 = vld [vmem:[%s4187_s20] sm:$0xff]  ;;  %s3475_s26 = smov 64  }
   0xc   :  { %3080 = vmatprep.subr.mxu1 %v143_v28 }
   0xd   :  { %3081 = vmatpush3.msra.mxu1 %v143_v28 }
   0xe   :  { %3082 = vmatprep.subr.mxu1 %v142_v29 }
   0xf   :  { %67 = vadd.xlane.f32.xlu0 %v66_v6  ;;  %73 = vadd.xlane.f32.xlu1 %v72_v7 }
  0x10   :  { %3083 = vmatpush3.msra.mxu1 %v142_v29 }
  0x11   :  { %3084 = vmatprep.subr.mxu1 %v141_v30 }
  0x12   :  { %3085 = vmatpush3.msra.mxu1 %v141_v30 }
  0x13   :  { %3086 = vmatprep.subr.mxu1 %v140_v31 }
  0x14   :  { %3087 = vmatpush3.msra.mxu1 %v140_v31 }
  0x94   :  { %v65_v8 = vpop.xlane.xlu0 %64  ;;  %v71_v9 = vpop.xlane.xlu1 %70 }
  0x95   :  { %v76_v10 = vmul.f32 0.03125, %v65_v8  ;;  %v78_v11 = vmul.f32 0.03125, %v71_v9 }
  0x97   :  { %v80_v12 = vsub.f32 %v56_v0, %v76_v10  ;;  %v82_v13 = vsub.f32 %v58_v1, %v78_v11 }
  0x98   :  { %v68_v14 = vpop.xlane.xlu0 %67  ;;  %v74_v15 = vpop.xlane.xlu1 %73 }
  0x99   :  { %v77_v16 = vmul.f32 0.03125, %v68_v14  ;;  %v79_v17 = vmul.f32 0.03125, %v74_v15  ;;  %v84_v18 = vmul.f32 %v80_v12, %v80_v12  ;;  %v86_v19 = vmul.f32 %v82_v13, %v82_v13  ;;  %v3668_v15 = vld [vmem:[%s4169_s1] sm:$0xff] }
  0x9b   :  { %v81_v20 = vsub.f32 %v57_v2, %v77_v16  ;;  %v83_v21 = vsub.f32 %v59_v5, %v79_v17  ;;  %v88_v22 = vsel %vm62_vm0, %v84_v18, 0.0  ;;  %v94_v23 = vsel %vm62_vm0, %v86_v19, 0.0  ;;  %v3674_v19 = vld [vmem:[%s4169_s1 + $0x18] sm:$0xff] }
  0x9c   :  { %89 = vadd.xlane.f32.xlu0 %v88_v22 }
  0x9d   :  { %v85_v24 = vmul.f32 %v81_v20, %v81_v20  ;;  %v87_v25 = vmul.f32 %v83_v21, %v83_v21 }
  0x9f   :  { %v91_v26 = vsel %vm62_vm0, %v85_v24, 0.0  ;;  %v97_v27 = vsel %vm62_vm0, %v87_v25, 0.0 }
  0xa0   :  { %95 = vadd.xlane.f32.xlu0 %v94_v23  ;;  %92 = vadd.xlane.f32.xlu1 %v91_v26 }
  0xa4   :  { %98 = vadd.xlane.f32.xlu1 %v97_v27  ;;  %v3683_v27 = vld [vmem:[%s4169_s1 + $0x10] sm:$0xff] }
 0x125   :  { %v90_v32 = vpop.xlane.xlu0 %89 }
 0x126   :  { %v100_v33 = vmul.f32 0.03125, %v90_v32 }
 0x128   :  { %v104_v34 = vadd.f32 1e-12, %v100_v33 }
 0x129   :  { %v93_v35 = vpop.xlane.xlu1 %92  ;;  %v96_v36 = vpop.xlane.xlu0 %95 }
 0x12a   :  { %3350 = vrsqrt.f32 %v104_v34  ;;  %v101_v37 = vmul.f32 0.03125, %v93_v35  ;;  %v102_v38 = vmul.f32 0.03125, %v96_v36 }
 0x12c   :  { %v105_v39 = vadd.f32 1e-12, %v101_v37  ;;  %v106_v40 = vadd.f32 1e-12, %v102_v38 }
 0x12d   :  { %v99_v41 = vpop.xlane.xlu1 %98 }
 0x12e   :  { %3352 = vrsqrt.f32 %v105_v39  ;;  %v103_v42 = vmul.f32 0.03125, %v99_v41 }
 0x12f   :  { %3354 = vrsqrt.f32 %v106_v40 }
 0x130   :  { %v107_v43 = vadd.f32 1e-12, %v103_v42 }
 0x132   :  { %3356 = vrsqrt.f32 %v107_v43 }
 0x137   :  { %v3351_v44 = vpop.eup %3350 }
 0x138   :  { %v112_v46 = vmul.f32 %v3351_v44, %v80_v12  ;;  %v3663_v12 = vld [vmem:[%s4169_s1 + $0x8] sm:$0xff] }
 0x13a   :  { %v122_v48 = vmul.f32 %v2796_v45, %v112_v46 }
 0x13b   :  { %v3353_v49 = vpop.eup %3352 }
 0x13c   :  { %v3355_v50 = vpop.eup %3354  ;;  %v3609_v51 = vadd.f32 %v2797_v47, %v122_v48  ;;  %v113_v52 = vmul.f32 %v3353_v49, %v81_v20 }
 0x13d   :  { %v114_v53 = vmul.f32 %v3355_v50, %v82_v13 }
 0x13e   :  { %3088 = vmatprep.mubr.msk.f32.mxu1 %vm62_vm0, %v3609_v51  ;;  %v123_v54 = vmul.f32 %v2796_v45, %v113_v52 }
 0x13f   :  { %v3357_v55 = vpop.eup %3356  ;;  %v124_v56 = vmul.f32 %v2796_v45, %v114_v53 }
 0x140   :  { %v3613_v57 = vadd.f32 %v2797_v47, %v123_v54  ;;  %v115_v58 = vmul.f32 %v3357_v55, %v83_v21 }
 0x141   :  { %v3615_v59 = vadd.f32 %v2797_v47, %v124_v56 }
 0x142   :  { %3089 = vmatmul.mubr.msk.f32.vlgmr.msra.gmra.mxu1 %vm62_vm0, %v3613_v57  ;;  %v125_v60 = vmul.f32 %v2796_v45, %v115_v58 }
 0x143   :  { %3091 = vmatprep.mubr.msk.f32.mxu1 %vm62_vm0, %v3615_v59 }
 0x144   :  { %v3621_v61 = vadd.f32 %v2797_v47, %v125_v60 }
 0x146   :  { %3092 = vmatmul.mubr.msk.f32.gmra.mxu1 %vm62_vm0, %v3621_v61 }
 0x202   :  { %v3090_v62 = vpop.f32.mrf.mxu1 }
 0x203   :  { %v3640_v6 = vadd.f32 %v3090_v62, %v2798_v63 }
 0x204   :  { %v229_v0 = vpop.f32.mrf.mxu1 }
 0x205   :  { %v3628_v1 = vadd.f32 %v2798_v63, %v229_v0 }
 0x206   :  { %v3093_v2 = vpop.f32.mrf.mxu1 }
 0x207   :  { %v3630_v3 = vadd.f32 %v3093_v2, %v2798_v63  ;;  %3102 = vmatprep.mubr.msk.f32.mxu1 %vm264_vm1, %v3628_v1 }
 0x208   :  { %v239_v4 = vpop.f32.mrf.mxu1 }
 0x209   :  { %v3634_v5 = vadd.f32 %v2798_v63, %v239_v4  ;;  %262 = vrot.lane.b32.xlu0 %v3630_v3, %s3474_s30 }
 0x20b   :  { %260 = vrot.lane.b32.xlu1 %v3634_v5, %s3474_s30 }
 0x20f   :  { %258 = vrot.lane.b32.xlu1 %v3640_v6, %s3474_s30 }
 0x213   :  { %256 = vrot.lane.b32.xlu1 %v3628_v1, %s3474_s30 }
 0x27b   :  { %v263_v7 = vpop.permute.xlu0 %262 }
 0x27c   :  { %3094 = vmatprep.subr.msk.mxu1 %vm264_vm1, %v263_v7 }
 0x27d   :  { %3095 = vmatpush3.xpose.msk.msra.mxu1 %vm264_vm1, %v263_v7  ;;  %v261_v8 = vpop.permute.xlu1 %260 }
 0x27e   :  { %3096 = vmatprep.subr.msk.mxu1 %vm264_vm1, %v261_v8 }
 0x281   :  { %3097 = vmatpush3.xpose.msk.msra.mxu1 %vm264_vm1, %v261_v8  ;;  %v259_v9 = vpop.permute.xlu1 %258 }
 0x282   :  { %3098 = vmatprep.subr.msk.mxu1 %vm264_vm1, %v259_v9 }
 0x285   :  { %3099 = vmatpush3.xpose.msk.msra.mxu1 %vm264_vm1, %v259_v9  ;;  %v257_v10 = vpop.permute.xlu1 %256 }
 0x286   :  { %3100 = vmatprep.subr.msk.mxu1 %vm264_vm1, %v257_v10 }
 0x289   :  { %3101 = vmatpush3.xpose.msk.msra.mxu1 %vm264_vm1, %v257_v10 }
 0x28c   :  { %3103 = vmatmul.mubr.msk.f32.vlgmr.msra.gmra.mxu1 %vm264_vm1, %v3640_v6 }
 0x28d   :  { %3105 = vmatprep.mubr.msk.f32.mxu1 %vm264_vm1, %v3634_v5 }
 0x290   :  { %3106 = vmatmul.mubr.msk.f32.gmra.mxu1 %vm264_vm1, %v3630_v3 }
 0x34c   :  { %v3104_v11 = vpop.f32.mrf.mxu1 }
 0x34d   :  { %v367_v13 = vmul.f32 0.25, %v3104_v11 }
 0x34e   :  { %v347_v14 = vpop.f32.mrf.mxu1 }
 0x34f   :  { %v366_v16 = vmul.f32 0.25, %v347_v14  ;;  %v371_v17 = vadd.f32 %v367_v13, %v3663_v12 }
 0x350   :  { %v3107_v18 = vpop.f32.mrf.mxu1 }
 0x351   :  { %v369_v20 = vmul.f32 0.25, %v3107_v18  ;;  %v377_v21 = vsel %vm62_vm0, %v371_v17, -inf  ;;  %v370_v22 = vadd.f32 %v366_v16, %v3668_v15 }
 0x352   :  { %378 = vmax.xlane.f32.xlu1 %v377_v21  ;;  %v357_v23 = vpop.f32.mrf.mxu1 }
 0x353   :  { %v368_v24 = vmul.f32 0.25, %v357_v23  ;;  %v374_v25 = vsel %vm62_vm0, %v370_v22, -inf  ;;  %v373_v26 = vadd.f32 %v369_v20, %v3674_v19  ;;  %v248_v23 = vld [vmem:[%s4170_s7] sm:$0xff] }
 0x354   :  { %375 = vmax.xlane.f32.xlu0 %v374_v25 }
 0x355   :  { %v383_v28 = vsel %vm62_vm0, %v373_v26, -inf  ;;  %v372_v29 = vadd.f32 %v368_v24, %v3683_v27 }
 0x357   :  { %v380_v30 = vsel %vm62_vm0, %v372_v29, -inf }
 0x358   :  { %384 = vmax.xlane.f32.xlu0 %v383_v28 }
 0x35c   :  { %381 = vmax.xlane.f32.xlu0 %v380_v30 }
 0x363   :  { %422 = vrot.lane.b32.xlu1 %v3634_v5, %s3475_s26 }
 0x367   :  { %420 = vrot.lane.b32.xlu1 %v3640_v6, %s3475_s26 }
 0x36b   :  { %418 = vrot.lane.b32.xlu1 %v3628_v1, %s3475_s26 }
 0x372   :  { %424 = vrot.lane.b32.xlu0 %v3630_v3, %s3475_s26 }
 0x3db   :  { %v379_v31 = vpop.xlane.xlu1 %378 }
 0x3dc   :  { %v387_v32 = vsub.f32 %v371_v17, %v379_v31 }
 0x3dd   :  { %v376_v33 = vpop.xlane.xlu0 %375 }
 0x3de   :  { %v392_v34 = vmul.f32 1.442695, %v387_v32  ;;  %v386_v35 = vsub.f32 %v370_v22, %v376_v33  ;;  %v249_v22 = vld [vmem:[%s4170_s7 + $0x8] sm:$0xff] }
 0x3df   :  { %v423_v38 = vpop.permute.xlu1 %422 }
 0x3e0   :  { %3358 = vpow2.f32 %v392_v34  ;;  %v390_v36 = vmul.f32 1.442695, %v386_v35 }
 0x3e1   :  { %v385_v37 = vpop.xlane.xlu0 %384 }
 0x3e2   :  { %3360 = vpow2.f32 %v390_v36  ;;  %v389_v47 = vsub.f32 %v373_v26, %v385_v37 }
 0x3e3   :  { %v421_v40 = vpop.permute.xlu1 %420 }
 0x3e4   :  { %v396_v49 = vmul.f32 1.442695, %v389_v47 }
 0x3e5   :  { %v382_v39 = vpop.xlane.xlu0 %381 }
 0x3e6   :  { %v388_v48 = vsub.f32 %v372_v29, %v382_v39  ;;  %3362 = vpow2.f32 %v396_v49 }
 0x3e7   :  { %v419_v45 = vpop.permute.xlu1 %418 }
 0x3e8   :  { %v394_v50 = vmul.f32 1.442695, %v388_v48 }
 0x3e9   :  { %v425_v41 = vpop.permute.xlu0 %424 }
 0x3ea   :  { %3108 = vmatprep.subr.mxu0 %v425_v41  ;;  %3364 = vpow2.f32 %v394_v50 }
 0x3eb   :  { %3109 = vmatpush3.msra.mxu0 %v425_v41 }
 0x3ec   :  { %3110 = vmatprep.subr.mxu0 %v423_v38 }
 0x3ed   :  { %v3359_v42 = vpop.eup %3358  ;;  %3111 = vmatpush3.msra.mxu0 %v423_v38 }
 0x3ee   :  { %3112 = vmatprep.subr.mxu0 %v421_v40  ;;  %v401_v43 = vsel %vm62_vm0, %v3359_v42, 0.0 }
 0x3ef   :  { %v3361_v44 = vpop.eup %3360  ;;  %402 = vadd.xlane.f32.xlu1 %v401_v43  ;;  %3113 = vmatpush3.msra.mxu0 %v421_v40 }
 0x3f0   :  { %3114 = vmatprep.subr.mxu0 %v419_v45  ;;  %v398_v46 = vsel %vm62_vm0, %v3361_v44, 0.0 }
 0x3f1   :  { %399 = vadd.xlane.f32.xlu0 %v398_v46  ;;  %3115 = vmatpush3.msra.mxu0 %v419_v45 }
 0x3f3   :  { %v3363_v52 = vpop.eup %3362 }
 0x3f4   :  { %v407_v54 = vsel %vm62_vm0, %v3363_v52, 0.0 }
 0x3f7   :  { %v3365_v53 = vpop.eup %3364 }
 0x3f8   :  { %v404_v55 = vsel %vm62_vm0, %v3365_v53, 0.0 }
 0x400   :  { %539 = vrot.lane.b32.xlu1 %v3634_v5, %s3476_s27 }
 0x407   :  { %541 = vrot.lane.b32.xlu0 %v3630_v3, %s3476_s27 }
 0x424   :  { %408 = vadd.xlane.f32.xlu1 %v407_v54 }
 0x426   :  { %405 = vadd.xlane.f32.xlu0 %v404_v55 }
 0x435   :  { %535 = vrot.lane.b32.xlu1 %v3628_v1, %s3476_s27 }
 0x439   :  { %529 = vrot.lane.b32.xlu1 %v3640_v6, %s3477_s28 }
 0x43c   :  { %537 = vrot.lane.b32.xlu0 %v3640_v6, %s3476_s27 }
 0x43d   :  { %533 = vrot.lane.b32.xlu1 %v3630_v3, %s3477_s28 }
 0x440   :  { %527 = vrot.lane.b32.xlu0 %v3628_v1, %s3477_s28 }
 0x444   :  { %531 = vrot.lane.b32.xlu0 %v3634_v5, %s3477_s28 }
 0x478   :  { %v403_v56 = vpop.xlane.xlu1 %402 }
 0x479   :  { %3366 = vrcp.f32 %v403_v56 }
 0x47a   :  { %v400_v58 = vpop.xlane.xlu0 %399 }
 0x47b   :  { %3368 = vrcp.f32 %v400_v58 }
 0x47c   :  { %v540_v4 = vpop.permute.xlu1 %539 }
 0x47e   :  { %v542_v60 = vpop.permute.xlu0 %541 }
 0x47f   :  { %3122 = vmatprep.subr.msk.mxu0 %vm264_vm1, %v542_v60 }
 0x486   :  { %v3367_v62 = vpop.eup %3366 }
 0x487   :  { %v415_v2 = vmul.f32 %v3367_v62, %v3359_v42 }
 0x488   :  { %v3369_v63 = vpop.eup %3368 }
 0x489   :  { %v414_v0 = vmul.f32 %v3369_v63, %v3361_v44 }
 0x48b   :  { %3116 = vmatprep.mubr.msk.f32.mxu0 %vm62_vm0, %v414_v0 }
 0x48c   :  { %3117 = vmatmul.mubr.msk.f32.vlgmr.msra.gmra.mxu0 %vm62_vm0, %v415_v2 }
 0x48d   :  { %3123 = vmatpush3.xpose.msk.msra.mxu0 %vm264_vm1, %v542_v60 }
 0x48e   :  { %3124 = vmatprep.subr.msk.mxu0 %vm264_vm1, %v540_v4 }
 0x491   :  { %3125 = vmatpush3.xpose.msk.msra.mxu0 %vm264_vm1, %v540_v4 }
 0x4ad   :  { %v409_v7 = vpop.xlane.xlu1 %408 }
 0x4ae   :  { %3370 = vrcp.f32 %v409_v7 }
 0x4af   :  { %v406_v8 = vpop.xlane.xlu0 %405 }
 0x4b0   :  { %3372 = vrcp.f32 %v406_v8 }
 0x4b1   :  { %v536_v10 = vpop.permute.xlu1 %535 }
 0x4b3   :  { %v538_v9 = vpop.permute.xlu0 %537 }
 0x4b4   :  { %3126 = vmatprep.subr.msk.mxu0 %vm264_vm1, %v538_v9 }
 0x4b5   :  { %3127 = vmatpush3.xpose.msk.msra.mxu0 %vm264_vm1, %v538_v9  ;;  %v530_v18 = vpop.permute.xlu1 %529 }
 0x4b6   :  { %3128 = vmatprep.subr.msk.mxu0 %vm264_vm1, %v536_v10 }
 0x4b7   :  { %v528_v16 = vpop.permute.xlu0 %527 }
 0x4b9   :  { %3129 = vmatpush3.xpose.msk.msra.mxu0 %vm264_vm1, %v536_v10  ;;  %v534_v21 = vpop.permute.xlu1 %533 }
 0x4ba   :  { %3160 = vmatprep.subr.mxu0 %v249_v22 }
 0x4bb   :  { %v3371_v11 = vpop.eup %3370  ;;  %v532_v20 = vpop.permute.xlu0 %531 }
 0x4bc   :  { %v417_v17 = vmul.f32 %v3371_v11, %v3363_v52 }
 0x4bd   :  { %v3373_v13 = vpop.eup %3372 }
 0x4be   :  { %v416_v14 = vmul.f32 %v3373_v13, %v3365_v53 }
 0x4c0   :  { %3119 = vmatprep.mubr.msk.f32.mxu0 %vm62_vm0, %v416_v14  ;;  %v251_v14 = vld [vmem:[%s4170_s7 + $0x18] sm:$0xff] }
 0x4c1   :  { %3120 = vmatmul.mubr.msk.f32.gmra.mxu0 %vm62_vm0, %v417_v17 }
 0x4c2   :  { %3130 = vmatprep.mubr.msk.f32.mxu0 %vm264_vm1, %v528_v16 }
 0x4c5   :  { %3131 = vmatmul.mubr.msk.f32.vlgmr.msra.gmra.mxu0 %vm264_vm1, %v530_v18 }
 0x4c6   :  { %3133 = vmatprep.mubr.msk.f32.mxu0 %vm264_vm1, %v532_v20  ;;  %3161 = vmatpush3.msra.mxu0 %v249_v22 }
 0x4c7   :  { %3162 = vmatprep.subr.mxu0 %v248_v23 }
 0x4c8   :  { %3163 = vmatpush3.msra.mxu0 %v248_v23 }
 0x4c9   :  { %3134 = vmatmul.mubr.msk.f32.gmra.mxu0 %vm264_vm1, %v534_v21  ;;  %v250_v21 = vld [vmem:[%s4170_s7 + $0x10] sm:$0xff] }
 0x54c   :  { %v3118_v24 = vpop.f32.mrf.mxu0 }
 0x54e   :  { %v508_v25 = vpop.f32.mrf.mxu0 }
 0x54f   :  { %3164 = vmatprep.mubr.msk.f32.mxu0 %vm264_vm1, %v508_v25 }
 0x550   :  { %3165 = vmatmul.mubr.msk.f32.vlgmr.msra.gmra.mxu0 %vm264_vm1, %v3118_v24 }
 0x581   :  { %v3121_v26 = vpop.f32.mrf.mxu0 }
 0x583   :  { %v518_v28 = vpop.f32.mrf.mxu0 }
 0x584   :  { %3167 = vmatprep.mubr.msk.f32.mxu0 %vm264_vm1, %v518_v28 }
 0x585   :  { %v3132_v29 = vpop.f32.mrf.mxu0  ;;  %3168 = vmatmul.mubr.msk.f32.gmra.mxu0 %vm264_vm1, %v3121_v26 }
 0x586   :  { %v645_v30 = vmul.f32 0.25, %v3132_v29 }
 0x587   :  { %v625_v31 = vpop.f32.mrf.mxu0 }
 0x588   :  { %v644_v32 = vmul.f32 0.25, %v625_v31  ;;  %v649_v33 = vadd.f32 %v645_v30, %v3663_v12  ;;  %v2835_v30 = vld [vmem:[%s4171_s8] ss:$0 sm:$0xff] }
 0x589   :  { %v3135_v34 = vpop.f32.mrf.mxu0 }
 0x58a   :  { %v655_v35 = vsel %vm62_vm0, %v649_v33, -inf  ;;  %v648_v36 = vadd.f32 %v644_v32, %v3668_v15  ;;  %v647_v38 = vmul.f32 0.25, %v3135_v34 }
 0x58b   :  { %656 = vmax.xlane.f32.xlu1 %v655_v35  ;;  %v635_v37 = vpop.f32.mrf.mxu0 }
 0x58c   :  { %v646_v39 = vmul.f32 0.25, %v635_v37  ;;  %v652_v40 = vsel %vm62_vm0, %v648_v36, -inf  ;;  %v651_v43 = vadd.f32 %v647_v38, %v3674_v19 }
 0x58d   :  { %653 = vmax.xlane.f32.xlu0 %v652_v40 }
 0x58e   :  { %v650_v41 = vadd.f32 %v646_v39, %v3683_v27  ;;  %v661_v12 = vsel %vm62_vm0, %v651_v43, -inf }
 0x590   :  { %v658_v42 = vsel %vm62_vm0, %v650_v41, -inf }
 0x591   :  { %659 = vmax.xlane.f32.xlu0 %v658_v42 }
 0x595   :  { %662 = vmax.xlane.f32.xlu0 %v661_v12 }
 0x610   :  { %v3166_v26 = vpop.f32.mrf.mxu0 }
 0x612   :  { %v980_v28 = vpop.f32.mrf.mxu0 }
 0x614   :  { %v657_v44 = vpop.xlane.xlu1 %656 }
 0x615   :  { %v665_v45 = vsub.f32 %v649_v33, %v657_v44 }
 0x616   :  { %v654_v15 = vpop.xlane.xlu0 %653 }
 0x617   :  { %v670_v46 = vmul.f32 1.442695, %v665_v45  ;;  %v664_v47 = vsub.f32 %v648_v36, %v654_v15 }
 0x619   :  { %3374 = vpow2.f32 %v670_v46  ;;  %v668_v48 = vmul.f32 1.442695, %v664_v47 }
 0x61a   :  { %v660_v49 = vpop.xlane.xlu0 %659 }
 0x61b   :  { %3376 = vpow2.f32 %v668_v48  ;;  %v666_v50 = vsub.f32 %v650_v41, %v660_v49 }
 0x61d   :  { %v672_v52 = vmul.f32 1.442695, %v666_v50 }
 0x61e   :  { %v663_v27 = vpop.xlane.xlu0 %662 }
 0x61f   :  { %3378 = vpow2.f32 %v672_v52  ;;  %v667_v53 = vsub.f32 %v651_v43, %v663_v27 }
 0x621   :  { %v674_v54 = vmul.f32 1.442695, %v667_v53 }
 0x623   :  { %3380 = vpow2.f32 %v674_v54 }
 0x626   :  { %v3375_v19 = vpop.eup %3374 }
 0x627   :  { %v679_v55 = vsel %vm62_vm0, %v3375_v19, 0.0 }
 0x628   :  { %v3377_v56 = vpop.eup %3376  ;;  %680 = vadd.xlane.f32.xlu1 %v679_v55 }
 0x629   :  { %v676_v58 = vsel %vm62_vm0, %v3377_v56, 0.0 }
 0x62a   :  { %677 = vadd.xlane.f32.xlu0 %v676_v58 }
 0x62c   :  { %v3379_v60 = vpop.eup %3378 }
 0x62d   :  { %v682_v62 = vsel %vm62_vm0, %v3379_v60, 0.0 }
 0x62e   :  { %683 = vadd.xlane.f32.xlu0 %v682_v62 }
 0x630   :  { %v3381_v63 = vpop.eup %3380 }
 0x631   :  { %v685_v0 = vsel %vm62_vm0, %v3381_v63, 0.0 }
 0x632   :  { %686 = vadd.xlane.f32.xlu1 %v685_v0 }
 0x643   :  { %700 = vrot.lane.b32.xlu1 %v3634_v5, %s3478_s18 }
 0x644   :  { %702 = vrot.lane.b32.xlu0 %v3630_v3, %s3478_s18 }
 0x645   :  { %v3169_v32 = vpop.f32.mrf.mxu0 }
 0x647   :  { %698 = vrot.lane.b32.xlu1 %v3640_v6, %s3478_s18  ;;  %v990_v40 = vpop.f32.mrf.mxu0 }
 0x64b   :  { %696 = vrot.lane.b32.xlu1 %v3628_v1, %s3478_s18 }
 0x6b1   :  { %v681_v4 = vpop.xlane.xlu1 %680 }
 0x6b3   :  { %v678_v2 = vpop.xlane.xlu0 %677 }
 0x6b4   :  { %3382 = vrcp.f32 %v678_v2 }
 0x6b5   :  { %3384 = vrcp.f32 %v681_v4 }
 0x6b7   :  { %v684_v7 = vpop.xlane.xlu0 %683 }
 0x6b8   :  { %3386 = vrcp.f32 %v684_v7 }
 0x6bb   :  { %v687_v8 = vpop.xlane.xlu1 %686  ;;  %v703_v9 = vpop.permute.xlu0 %702 }
 0x6bc   :  { %3388 = vrcp.f32 %v687_v8  ;;  %3136 = vmatprep.subr.mxu1 %v703_v9  ;;  %v1091_v8 = vld [vmem:[%s4172_s11 + $0x18] sm:$0xff] }
 0x6bd   :  { %3137 = vmatpush3.msra.mxu1 %v703_v9  ;;  %v1090_v9 = vld [vmem:[%s4172_s11 + $0x10] sm:$0xff] }
 0x6bf   :  { %v701_v5 = vpop.permute.xlu1 %700 }
 0x6c0   :  { %3138 = vmatprep.subr.mxu1 %v701_v5 }
 0x6c1   :  { %v3383_v3 = vpop.eup %3382  ;;  %3139 = vmatpush3.msra.mxu1 %v701_v5  ;;  %v1089_v5 = vld [vmem:[%s4172_s11 + $0x8] sm:$0xff] }
 0x6c2   :  { %v692_v10 = vmul.f32 %v3383_v3, %v3377_v56  ;;  %v3385_v1 = vpop.eup %3384  ;;  %v1088_v3 = vld [vmem:[%s4172_s11] sm:$0xff] }
 0x6c3   :  { %v699_v6 = vpop.permute.xlu1 %698  ;;  %v693_v16 = vmul.f32 %v3385_v1, %v3375_v19 }
 0x6c4   :  { %3140 = vmatprep.subr.mxu1 %v699_v6  ;;  %3144 = vmatprep.mubr.msk.f32.mxu1 %vm62_vm0, %v692_v10 }
 0x6c5   :  { %3141 = vmatpush3.msra.mxu1 %v699_v6  ;;  %v3387_v11 = vpop.eup %3386 }
 0x6c6   :  { %v694_v18 = vmul.f32 %v3387_v11, %v3379_v60 }
 0x6c7   :  { %v697_v13 = vpop.permute.xlu1 %696 }
 0x6c8   :  { %3142 = vmatprep.subr.mxu1 %v697_v13 }
 0x6c9   :  { %v3389_v17 = vpop.eup %3388  ;;  %3143 = vmatpush3.msra.mxu1 %v697_v13 }
 0x6ca   :  { %3145 = vmatmul.mubr.msk.f32.vlgmr.msra.gmra.mxu1 %vm62_vm0, %v693_v16  ;;  %3150 = vmatprep.subr.mxu1 %v251_v14  ;;  %v695_v20 = vmul.f32 %v3389_v17, %v3381_v63 }
 0x6cb   :  { %3147 = vmatprep.mubr.msk.f32.mxu1 %vm62_vm0, %v694_v18  ;;  %3151 = vmatpush3.msra.mxu1 %v251_v14 }
 0x6cc   :  { %3152 = vmatprep.subr.mxu1 %v250_v21 }
 0x6cd   :  { %3153 = vmatpush3.msra.mxu1 %v250_v21 }
 0x6ce   :  { %3148 = vmatmul.mubr.msk.f32.gmra.mxu1 %vm62_vm0, %v695_v20  ;;  %3170 = vmatprep.subr.mxu1 %v1091_v8 }
 0x78a   :  { %v3146_v22 = vpop.f32.mrf.mxu1 }
 0x78c   :  { %v786_v23 = vpop.f32.mrf.mxu1 }
 0x78d   :  { %3154 = vmatprep.mubr.msk.f32.mxu1 %vm264_vm1, %v786_v23 }
 0x78e   :  { %v3149_v24 = vpop.f32.mrf.mxu1  ;;  %3155 = vmatmul.mubr.msk.f32.vlgmr.msra.gmra.mxu1 %vm264_vm1, %v3146_v22 }
 0x78f   :  { %3171 = vmatpush3.msra.mxu1 %v1091_v8 }
 0x790   :  { %v796_v25 = vpop.f32.mrf.mxu1  ;;  %3172 = vmatprep.subr.mxu1 %v1090_v9 }
 0x791   :  { %3157 = vmatprep.mubr.msk.f32.mxu1 %vm264_vm1, %v796_v25  ;;  %3173 = vmatpush3.msra.mxu1 %v1090_v9  ;;  %v2836_v25 = vld [vmem:[%s4173_s9] ss:$0 sm:$0xff] }
 0x792   :  { %3158 = vmatmul.mubr.msk.f32.gmra.mxu1 %vm264_vm1, %v3149_v24  ;;  %3174 = vmatprep.subr.mxu1 %v1089_v5 }
 0x793   :  { %3175 = vmatpush3.msra.mxu1 %v1089_v5 }
 0x794   :  { %3176 = vmatprep.subr.mxu1 %v1088_v3 }
 0x795   :  { %3177 = vmatpush3.msra.mxu1 %v1088_v3 }
 0x84e   :  { %v3156_v29 = vpop.f32.mrf.mxu1 }
 0x84f   :  { %v986_v31 = vadd.f32 %v3166_v26, %v3156_v29 }
 0x850   :  { %v883_v33 = vpop.f32.mrf.mxu1 }
 0x851   :  { %v1007_v34 = vadd.f32 %v2835_v30, %v986_v31  ;;  %v981_v35 = vadd.f32 %v980_v28, %v883_v33 }
 0x852   :  { %v3159_v36 = vpop.f32.mrf.mxu1 }
 0x853   :  { %v1006_v37 = vadd.f32 %v2835_v30, %v981_v35  ;;  %v996_v38 = vadd.f32 %v3169_v32, %v3159_v36  ;;  %v1011_v39 = vadd.f32 %v1007_v34, %v3613_v57 }
 0x854   :  { %v893_v41 = vpop.f32.mrf.mxu1 }
 0x855   :  { %v991_v42 = vadd.f32 %v990_v40, %v893_v41  ;;  %v1019_v43 = vsel %vm62_vm0, %v1011_v39, 0.0  ;;  %v1010_v12 = vadd.f32 %v1006_v37, %v3609_v51  ;;  %v1009_v44 = vadd.f32 %v2835_v30, %v996_v38 }
 0x856   :  { %1020 = vadd.xlane.f32.xlu1 %v1019_v43  ;;  %v1238_v43 = vld [vmem:[%s4175_s13 + $0x30] sm:$0xff] }
 0x857   :  { %v1008_v45 = vadd.f32 %v2835_v30, %v991_v42  ;;  %v1016_v15 = vsel %vm62_vm0, %v1010_v12, 0.0  ;;  %v1013_v48 = vadd.f32 %v1009_v44, %v3621_v61  ;;  %v2837_v30 = vld [vmem:[%s4174_s10] ss:$0 sm:$0xff]  ;;  %v1239_v42 = vld [vmem:[%s4175_s13 + $0x38] sm:$0xff] }
 0x858   :  { %1017 = vadd.xlane.f32.xlu0 %v1016_v15  ;;  %3184 = vmatprep.subr.mxu0 %v1239_v42  ;;  %v1236_v44 = vld [vmem:[%s4175_s13 + $0x20] sm:$0xff]  ;;  %v1234_v15 = vld [vmem:[%s4175_s13 + $0x10] sm:$0xff] }
 0x859   :  { %v1012_v46 = vadd.f32 %v1008_v45, %v3615_v59  ;;  %v1025_v57 = vsel %vm62_vm0, %v1013_v48, 0.0  ;;  %3185 = vmatpush3.msra.mxu0 %v1239_v42  ;;  %v1235_v45 = vld [vmem:[%s4175_s13 + $0x18] sm:$0xff] }
 0x85a   :  { %3186 = vmatprep.subr.mxu0 %v1238_v43 }
 0x85b   :  { %v1022_v47 = vsel %vm62_vm0, %v1012_v46, 0.0  ;;  %3187 = vmatpush3.msra.mxu0 %v1238_v43 }
 0x85c   :  { %1023 = vadd.xlane.f32.xlu0 %v1022_v47  ;;  %v1232_v47 = vld [vmem:[%s4175_s13] sm:$0xff] }
 0x860   :  { %1026 = vadd.xlane.f32.xlu0 %v1025_v57 }
 0x8df   :  { %v1021_v49 = vpop.xlane.xlu1 %1020 }
 0x8e0   :  { %v1029_v50 = vmul.f32 0.03125, %v1021_v49 }
 0x8e1   :  { %v1018_v52 = vpop.xlane.xlu0 %1017 }
 0x8e2   :  { %v1033_v51 = vsub.f32 %v1011_v39, %v1029_v50  ;;  %v1028_v27 = vmul.f32 0.03125, %v1018_v52 }
 0x8e4   :  { %v1032_v53 = vsub.f32 %v1010_v12, %v1028_v27  ;;  %v1037_v54 = vmul.f32 %v1033_v51, %v1033_v51  ;;  %v1237_v12 = vld [vmem:[%s4175_s13 + $0x28] sm:$0xff] }
 0x8e5   :  { %v1024_v19 = vpop.xlane.xlu0 %1023  ;;  %3188 = vmatprep.subr.mxu0 %v1237_v12 }
 0x8e6   :  { %v1030_v55 = vmul.f32 0.03125, %v1024_v19  ;;  %v1043_v56 = vsel %vm62_vm0, %v1037_v54, 0.0  ;;  %v1036_v59 = vmul.f32 %v1032_v53, %v1032_v53  ;;  %3189 = vmatpush3.msra.mxu0 %v1237_v12 }
 0x8e7   :  { %1044 = vadd.xlane.f32.xlu1 %v1043_v56  ;;  %3190 = vmatprep.subr.mxu0 %v1236_v44 }
 0x8e8   :  { %v1034_v58 = vsub.f32 %v1012_v46, %v1030_v55  ;;  %v1040_v61 = vsel %vm62_vm0, %v1036_v59, 0.0  ;;  %3191 = vmatpush3.msra.mxu0 %v1236_v44  ;;  %v1233_v46 = vld [vmem:[%s4175_s13 + $0x8] sm:$0xff] }
 0x8e9   :  { %1041 = vadd.xlane.f32.xlu0 %v1040_v61  ;;  %v1027_v60 = vpop.xlane.xlu0 %1026  ;;  %3192 = vmatprep.subr.mxu0 %v1235_v45 }
 0x8ea   :  { %v1031_v62 = vmul.f32 0.03125, %v1027_v60  ;;  %v1038_v63 = vmul.f32 %v1034_v58, %v1034_v58  ;;  %3193 = vmatpush3.msra.mxu0 %v1235_v45 }
 0x8eb   :  { %3194 = vmatprep.subr.mxu0 %v1234_v15 }
 0x8ec   :  { %v1035_v0 = vsub.f32 %v1013_v48, %v1031_v62  ;;  %v1046_v2 = vsel %vm62_vm0, %v1038_v63, 0.0  ;;  %3195 = vmatpush3.msra.mxu0 %v1234_v15  ;;  %v2838_v48 = vld [vmem:[%s4176_s12] ss:$0 sm:$0xff] }
 0x8ed   :  { %1047 = vadd.xlane.f32.xlu0 %v1046_v2  ;;  %3196 = vmatprep.subr.mxu0 %v1233_v46 }
 0x8ee   :  { %v1039_v4 = vmul.f32 %v1035_v0, %v1035_v0  ;;  %3197 = vmatpush3.msra.mxu0 %v1233_v46 }
 0x8ef   :  { %3198 = vmatprep.subr.mxu0 %v1232_v47 }
 0x8f0   :  { %v1049_v7 = vsel %vm62_vm0, %v1039_v4, 0.0  ;;  %3199 = vmatpush3.msra.mxu0 %v1232_v47 }
 0x8f1   :  { %1050 = vadd.xlane.f32.xlu1 %v1049_v7 }
 0x970   :  { %v1045_v10 = vpop.xlane.xlu1 %1044 }
 0x971   :  { %v1053_v6 = vmul.f32 0.03125, %v1045_v10 }
 0x972   :  { %v1042_v1 = vpop.xlane.xlu0 %1041 }
 0x973   :  { %v1057_v11 = vadd.f32 1e-12, %v1053_v6  ;;  %v1052_v13 = vmul.f32 0.03125, %v1042_v1 }
 0x975   :  { %3390 = vrsqrt.f32 %v1057_v11  ;;  %v1056_v14 = vadd.f32 1e-12, %v1052_v13 }
 0x976   :  { %v1048_v16 = vpop.xlane.xlu0 %1047 }
 0x977   :  { %3392 = vrsqrt.f32 %v1056_v14  ;;  %v1054_v17 = vmul.f32 0.03125, %v1048_v16 }
 0x979   :  { %v1058_v18 = vadd.f32 1e-12, %v1054_v17 }
 0x97a   :  { %v1051_v20 = vpop.xlane.xlu1 %1050 }
 0x97b   :  { %3394 = vrsqrt.f32 %v1058_v18  ;;  %v1055_v21 = vmul.f32 0.03125, %v1051_v20 }
 0x97d   :  { %v1059_v22 = vadd.f32 1e-12, %v1055_v21 }
 0x97f   :  { %3396 = vrsqrt.f32 %v1059_v22 }
 0x982   :  { %v3391_v23 = vpop.eup %3390 }
 0x983   :  { %v1065_v24 = vmul.f32 %v3391_v23, %v1033_v51 }
 0x984   :  { %v3393_v26 = vpop.eup %3392 }
 0x985   :  { %v1064_v28 = vmul.f32 %v3393_v26, %v1032_v53  ;;  %v1075_v29 = vmul.f32 %v2836_v25, %v1065_v24 }
 0x987   :  { %v1074_v31 = vmul.f32 %v2836_v25, %v1064_v28  ;;  %v3811_v35 = vadd.f32 %v2837_v30, %v1075_v29 }
 0x988   :  { %v3395_v32 = vpop.eup %3394 }
 0x989   :  { %v3809_v33 = vadd.f32 %v2837_v30, %v1074_v31  ;;  %v1066_v34 = vmul.f32 %v3395_v32, %v1034_v58  ;;  %v2843_v31 = vld [vmem:[%s4177_s14] ss:$0 sm:$0xff] }
 0x98b   :  { %3178 = vmatprep.mubr.msk.f32.mxu1 %vm62_vm0, %v3809_v33  ;;  %v1076_v36 = vmul.f32 %v2836_v25, %v1066_v34 }
 0x98c   :  { %v3397_v37 = vpop.eup %3396  ;;  %3179 = vmatmul.mubr.msk.f32.vlgmr.msra.gmra.mxu1 %vm62_vm0, %v3811_v35 }
 0x98d   :  { %v3817_v38 = vadd.f32 %v2837_v30, %v1076_v36  ;;  %v1067_v39 = vmul.f32 %v3397_v37, %v1035_v0 }
 0x98f   :  { %3181 = vmatprep.mubr.msk.f32.mxu1 %vm62_vm0, %v3817_v38  ;;  %v1077_v40 = vmul.f32 %v2836_v25, %v1067_v39 }
 0x991   :  { %v3821_v41 = vadd.f32 %v2837_v30, %v1077_v40 }
 0x993   :  { %3182 = vmatmul.mubr.msk.f32.gmra.mxu1 %vm62_vm0, %v3821_v41 }
 0xa4c   :  { %v3180_v57 = vpop.f32.mrf.mxu1 }
 0xa4d   :  { %v1183_v49 = vadd.f32 %v3180_v57, %v2838_v48 }
 0xa4e   :  { %v1177_v50 = vpop.f32.mrf.mxu1 }
 0xa4f   :  { %v1197_v52 = vmul.f32 %v1183_v49, %v1183_v49  ;;  %v1178_v51 = vadd.f32 %v2838_v48, %v1177_v50 }
 0xa51   :  { %v1201_v27 = vmul.f32 %v1197_v52, %v1183_v49  ;;  %v1196_v53 = vmul.f32 %v1178_v51, %v1178_v51 }
 0xa53   :  { %v1205_v54 = vmul.f32 0.044715, %v1201_v27  ;;  %v1200_v19 = vmul.f32 %v1196_v53, %v1178_v51  ;;  %v3183_v55 = vpop.f32.mrf.mxu1 }
 0xa54   :  { %v1193_v56 = vadd.f32 %v3183_v55, %v2838_v48 }
 0xa55   :  { %v1209_v59 = vadd.f32 %v1205_v54, %v1183_v49  ;;  %v1204_v58 = vmul.f32 0.044715, %v1200_v19  ;;  %v1187_v61 = vpop.f32.mrf.mxu1 }
 0xa56   :  { %v1199_v60 = vmul.f32 %v1193_v56, %v1193_v56  ;;  %v1188_v62 = vadd.f32 %v2838_v48, %v1187_v61 }
 0xa57   :  { %v1213_v63 = vmul.f32 0.7978846, %v1209_v59  ;;  %v1208_v0 = vadd.f32 %v1204_v58, %v1178_v51 }
 0xa58   :  { %v1203_v2 = vmul.f32 %v1199_v60, %v1193_v56  ;;  %v1198_v4 = vmul.f32 %v1188_v62, %v1188_v62 }
 0xa59   :  { %3398 = vtanh.f32 %v1213_v63  ;;  %v1212_v7 = vmul.f32 0.7978846, %v1208_v0  ;;  %v2853_v0 = vld [vmem:[%s4187_s20 + $0x38] sm:$0xff] }
 0xa5a   :  { %v1207_v8 = vmul.f32 0.044715, %v1203_v2  ;;  %v1202_v9 = vmul.f32 %v1198_v4, %v1188_v62  ;;  %v2852_v2 = vld [vmem:[%s4187_s20 + $0x30] sm:$0xff]  ;;  %3206 = vmatprep.subr.mxu1 %v2853_v0  ;;  %v2851_v4 = vld [vmem:[%s4187_s20 + $0x28] sm:$0xff] }
 0xa5b   :  { %3400 = vtanh.f32 %v1212_v7  ;;  %3207 = vmatpush3.msra.mxu1 %v2853_v0  ;;  %v2850_v7 = vld [vmem:[%s4187_s20 + $0x20] sm:$0xff]  ;;  %v3964_v0 = vld [vmem:[%s4169_s1 + $0x10] sm:$0xff] }
 0xa5c   :  { %v1211_v5 = vadd.f32 %v1207_v8, %v1193_v56  ;;  %v1206_v3 = vmul.f32 0.044715, %v1202_v9  ;;  %3208 = vmatprep.subr.mxu1 %v2852_v2 }
 0xa5d   :  { %3209 = vmatpush3.msra.mxu1 %v2852_v2 }
 0xa5e   :  { %v1215_v10 = vmul.f32 0.7978846, %v1211_v5  ;;  %v1210_v6 = vadd.f32 %v1206_v3, %v1188_v62  ;;  %3210 = vmatprep.subr.mxu1 %v2851_v4 }
 0xa5f   :  { %3211 = vmatpush3.msra.mxu1 %v2851_v4 }
 0xa60   :  { %3402 = vtanh.f32 %v1215_v10  ;;  %v1214_v1 = vmul.f32 0.7978846, %v1210_v6  ;;  %3212 = vmatprep.subr.mxu1 %v2850_v7 }
 0xa61   :  { %3213 = vmatpush3.msra.mxu1 %v2850_v7 }
 0xa62   :  { %3404 = vtanh.f32 %v1214_v1 }
 0xa66   :  { %v3399_v11 = vpop.eup %3398 }
 0xa67   :  { %v1221_v13 = vadd.f32 1.0, %v3399_v11 }
 0xa68   :  { %v3401_v14 = vpop.eup %3400 }
 0xa69   :  { %v1220_v16 = vadd.f32 1.0, %v3401_v14  ;;  %v1225_v17 = vmul.f32 0.5, %v1221_v13 }
 0xa6b   :  { %v1224_v18 = vmul.f32 0.5, %v1220_v16  ;;  %v1229_v22 = vmul.f32 %v1225_v17, %v1183_v49 }
 0xa6d   :  { %v3403_v20 = vpop.eup %3402  ;;  %v1228_v21 = vmul.f32 %v1224_v18, %v1178_v51 }
 0xa6e   :  { %v1223_v23 = vadd.f32 1.0, %v3403_v20 }
 0xa6f   :  { %v3405_v24 = vpop.eup %3404  ;;  %3200 = vmatprep.mubr.msk.f32.mxu0 %vm1247_vm2, %v1228_v21  ;;  %v2848_v21 = vld [vmem:[%s4178_s15] ss:$0 sm:$0xff] }
 0xa70   :  { %3201 = vmatmul.mubr.msk.f32.vlgmr.msra.gmra.mxu0 %vm1247_vm2, %v1229_v22  ;;  %v1222_v25 = vadd.f32 1.0, %v3405_v24  ;;  %v1227_v26 = vmul.f32 0.5, %v1223_v23 }
 0xa72   :  { %v1226_v28 = vmul.f32 0.5, %v1222_v25  ;;  %v1231_v30 = vmul.f32 %v1227_v26, %v1193_v56  ;;  %v2849_v25 = vld [vmem:[%s4179_s16] ss:$0 sm:$0xff] }
 0xa74   :  { %v1230_v29 = vmul.f32 %v1226_v28, %v1188_v62 }
 0xa76   :  { %3203 = vmatprep.mubr.msk.f32.mxu0 %vm1247_vm2, %v1230_v29 }
 0xa77   :  { %3204 = vmatmul.mubr.msk.f32.gmra.mxu0 %vm1247_vm2, %v1231_v30 }
 0xb30   :  { %v3202_v32 = vpop.f32.mrf.mxu0 }
 0xb31   :  { %v1332_v34 = vadd.f32 %v3202_v32, %v2843_v31 }
 0xb32   :  { %v1326_v36 = vpop.f32.mrf.mxu0 }
 0xb33   :  { %v1327_v37 = vadd.f32 %v2843_v31, %v1326_v36  ;;  %v1346_v39 = vadd.f32 %v1332_v34, %v3811_v35 }
 0xb35   :  { %v1354_v40 = vsel %vm62_vm0, %v1346_v39, 0.0  ;;  %v1345_v42 = vadd.f32 %v1327_v37, %v3809_v33 }
 0xb36   :  { %1355 = vadd.xlane.f32.xlu1 %v1354_v40 }
 0xb37   :  { %v3205_v43 = vpop.f32.mrf.mxu0  ;;  %v1351_v12 = vsel %vm62_vm0, %v1345_v42, 0.0 }
 0xb38   :  { %v1342_v44 = vadd.f32 %v3205_v43, %v2843_v31  ;;  %1352 = vadd.xlane.f32.xlu0 %v1351_v12  ;;  %v2855_v43 = vld [vmem:[%s4168_s6 + $0x1] ss:$0 sm:$0xff] }
 0xb39   :  { %v1336_v45 = vpop.f32.mrf.mxu0 }
 0xb3a   :  { %v1337_v15 = vadd.f32 %v2843_v31, %v1336_v45  ;;  %v1348_v46 = vadd.f32 %v1342_v44, %v3821_v41 }
 0xb3c   :  { %v1360_v47 = vsel %vm62_vm0, %v1348_v46, 0.0  ;;  %v1347_v48 = vadd.f32 %v1337_v15, %v3817_v38 }
 0xb3d   :  { %1361 = vadd.xlane.f32.xlu1 %v1360_v47 }
 0xb3e   :  { %v1357_v35 = vsel %vm62_vm0, %v1347_v48, 0.0 }
 0xb3f   :  { %1358 = vadd.xlane.f32.xlu0 %v1357_v35 }
 0xbbf   :  { %v1356_v57 = vpop.xlane.xlu1 %1355 }
 0xbc0   :  { %v1364_v33 = vmul.f32 0.03125, %v1356_v57 }
 0xbc1   :  { %v1353_v49 = vpop.xlane.xlu0 %1352 }
 0xbc2   :  { %v1368_v50 = vsub.f32 %v1346_v39, %v1364_v33  ;;  %v1363_v52 = vmul.f32 0.03125, %v1353_v49 }
 0xbc4   :  { %v1367_v51 = vsub.f32 %v1345_v42, %v1363_v52  ;;  %v1372_v27 = vmul.f32 %v1368_v50, %v1368_v50 }
 0xbc6   :  { %v1362_v53 = vpop.xlane.xlu1 %1361  ;;  %v1378_v54 = vsel %vm62_vm0, %v1372_v27, 0.0  ;;  %v1371_v19 = vmul.f32 %v1367_v51, %v1367_v51 }
 0xbc7   :  { %v1366_v41 = vmul.f32 0.03125, %v1362_v53  ;;  %1379 = vadd.xlane.f32.xlu1 %v1378_v54  ;;  %v3943_v53 = vld [vmem:[%s4169_s1 + $0x8] sm:$0xff] }
 0xbc8   :  { %v1359_v55 = vpop.xlane.xlu0 %1358  ;;  %v1375_v38 = vsel %vm62_vm0, %v1371_v19, 0.0 }
 0xbc9   :  { %v1370_v56 = vsub.f32 %v1348_v46, %v1366_v41  ;;  %v1365_v59 = vmul.f32 0.03125, %v1359_v55  ;;  %1376 = vadd.xlane.f32.xlu0 %v1375_v38  ;;  %v3950_v38 = vld [vmem:[%s4169_s1] sm:$0xff] }
 0xbcb   :  { %v1369_v58 = vsub.f32 %v1347_v48, %v1365_v59  ;;  %v1374_v61 = vmul.f32 %v1370_v56, %v1370_v56 }
 0xbcd   :  { %v1384_v60 = vsel %vm62_vm0, %v1374_v61, 0.0  ;;  %v1373_v62 = vmul.f32 %v1369_v58, %v1369_v58 }
 0xbce   :  { %1385 = vadd.xlane.f32.xlu1 %v1384_v60  ;;  %v3957_v60 = vld [vmem:[%s4169_s1 + $0x18] sm:$0xff] }
 0xbcf   :  { %v1381_v63 = vsel %vm62_vm0, %v1373_v62, 0.0 }
 0xbd0   :  { %1382 = vadd.xlane.f32.xlu0 %v1381_v63 }
 0xc50   :  { %v1380_v8 = vpop.xlane.xlu1 %1379 }
 0xc51   :  { %v1388_v9 = vmul.f32 0.03125, %v1380_v8 }
 0xc52   :  { %v1377_v5 = vpop.xlane.xlu0 %1376 }
 0xc53   :  { %v1392_v3 = vadd.f32 1e-12, %v1388_v9  ;;  %v1387_v10 = vmul.f32 0.03125, %v1377_v5 }
 0xc55   :  { %3406 = vrsqrt.f32 %v1392_v3  ;;  %v1391_v6 = vadd.f32 1e-12, %v1387_v10 }
 0xc57   :  { %3408 = vrsqrt.f32 %v1391_v6  ;;  %v1386_v1 = vpop.xlane.xlu1 %1385 }
 0xc58   :  { %v1390_v11 = vmul.f32 0.03125, %v1386_v1 }
 0xc59   :  { %v1383_v13 = vpop.xlane.xlu0 %1382 }
 0xc5a   :  { %v1394_v14 = vadd.f32 1e-12, %v1390_v11  ;;  %v1389_v16 = vmul.f32 0.03125, %v1383_v13 }
 0xc5c   :  { %3410 = vrsqrt.f32 %v1394_v14  ;;  %v1393_v17 = vadd.f32 1e-12, %v1389_v16 }
 0xc5e   :  { %3412 = vrsqrt.f32 %v1393_v17 }
 0xc62   :  { %v3407_v18 = vpop.eup %3406 }
 0xc63   :  { %v1400_v20 = vmul.f32 %v3407_v18, %v1368_v50 }
 0xc64   :  { %v3409_v22 = vpop.eup %3408 }
 0xc65   :  { %v1399_v23 = vmul.f32 %v3409_v22, %v1367_v51  ;;  %v1410_v24 = vmul.f32 %v2848_v21, %v1400_v20 }
 0xc67   :  { %v1409_v26 = vmul.f32 %v2848_v21, %v1399_v23  ;;  %v3891_v30 = vadd.f32 %v2849_v25, %v1410_v24 }
 0xc69   :  { %v3411_v28 = vpop.eup %3410  ;;  %v3889_v29 = vadd.f32 %v2849_v25, %v1409_v26 }
 0xc6a   :  { %v1402_v31 = vmul.f32 %v3411_v28, %v1370_v56 }
 0xc6b   :  { %v3413_v32 = vpop.eup %3412  ;;  %3214 = vmatprep.mubr.msk.f32.mxu1 %vm62_vm0, %v3889_v29 }
 0xc6c   :  { %3215 = vmatmul.mubr.msk.f32.vlgmr.msra.gmra.mxu1 %vm62_vm0, %v3891_v30  ;;  %v1401_v34 = vmul.f32 %v3413_v32, %v1369_v58  ;;  %v1412_v36 = vmul.f32 %v2848_v21, %v1402_v31 }
 0xc6e   :  { %v1411_v37 = vmul.f32 %v2848_v21, %v1401_v34  ;;  %v3899_v40 = vadd.f32 %v2849_v25, %v1412_v36 }
 0xc70   :  { %v3897_v39 = vadd.f32 %v2849_v25, %v1411_v37 }
 0xc72   :  { %3217 = vmatprep.mubr.msk.f32.mxu1 %vm62_vm0, %v3897_v39 }
 0xc73   :  { %3218 = vmatmul.mubr.msk.f32.gmra.mxu1 %vm62_vm0, %v3899_v40 }
 0xd2c   :  { %v3216_v42 = vpop.f32.mrf.mxu1 }
 0xd2d   :  { %v3920_v48 = vadd.f32 %v3216_v42, %v2855_v43 }
 0xd2e   :  { %v1514_v12 = vpop.f32.mrf.mxu1 }
 0xd2f   :  { %v3908_v44 = vadd.f32 %v2855_v43, %v1514_v12 }
 0xd31   :  { %3228 = vmatprep.mubr.msk.f32.mxu1 %vm264_vm1, %v3908_v44 }
 0xd33   :  { %v3219_v45 = vpop.f32.mrf.mxu1 }
 0xd34   :  { %v3912_v15 = vadd.f32 %v3219_v45, %v2855_v43 }
 0xd35   :  { %v1524_v46 = vpop.f32.mrf.mxu1 }
 0xd36   :  { %v3914_v47 = vadd.f32 %v2855_v43, %v1524_v46  ;;  %1548 = vrot.lane.b32.xlu0 %v3912_v15, %s3474_s30 }
 0xd38   :  { %1546 = vrot.lane.b32.xlu1 %v3914_v47, %s3474_s30 }
 0xd3c   :  { %1544 = vrot.lane.b32.xlu1 %v3920_v48, %s3474_s30 }
 0xd40   :  { %1542 = vrot.lane.b32.xlu1 %v3908_v44, %s3474_s30 }
 0xda8   :  { %v1549_v35 = vpop.permute.xlu0 %1548 }
 0xda9   :  { %3220 = vmatprep.subr.msk.mxu1 %vm264_vm1, %v1549_v35 }
 0xdaa   :  { %3221 = vmatpush3.xpose.msk.msra.mxu1 %vm264_vm1, %v1549_v35  ;;  %v1547_v57 = vpop.permute.xlu1 %1546 }
 0xdab   :  { %3222 = vmatprep.subr.msk.mxu1 %vm264_vm1, %v1547_v57 }
 0xdae   :  { %3223 = vmatpush3.xpose.msk.msra.mxu1 %vm264_vm1, %v1547_v57  ;;  %v1545_v33 = vpop.permute.xlu1 %1544 }
 0xdaf   :  { %3224 = vmatprep.subr.msk.mxu1 %vm264_vm1, %v1545_v33 }
 0xdb2   :  { %3225 = vmatpush3.xpose.msk.msra.mxu1 %vm264_vm1, %v1545_v33  ;;  %v1543_v49 = vpop.permute.xlu1 %1542 }
 0xdb3   :  { %3226 = vmatprep.subr.msk.mxu1 %vm264_vm1, %v1543_v49 }
 0xdb6   :  { %3227 = vmatpush3.xpose.msk.msra.mxu1 %vm264_vm1, %v1543_v49 }
 0xdb9   :  { %3229 = vmatmul.mubr.msk.f32.vlgmr.msra.gmra.mxu1 %vm264_vm1, %v3920_v48 }
 0xdba   :  { %3231 = vmatprep.mubr.msk.f32.mxu1 %vm264_vm1, %v3914_v47 }
 0xdbd   :  { %3232 = vmatmul.mubr.msk.f32.gmra.mxu1 %vm264_vm1, %v3912_v15 }
 0xe79   :  { %v3230_v50 = vpop.f32.mrf.mxu1 }
 0xe7a   :  { %v1652_v52 = vmul.f32 0.25, %v3230_v50 }
 0xe7b   :  { %v1632_v51 = vpop.f32.mrf.mxu1 }
 0xe7c   :  { %v1651_v27 = vmul.f32 0.25, %v1632_v51  ;;  %v1656_v54 = vadd.f32 %v3943_v53, %v1652_v52 }
 0xe7d   :  { %v3233_v19 = vpop.f32.mrf.mxu1 }
 0xe7e   :  { %v1654_v41 = vmul.f32 0.25, %v3233_v19  ;;  %v1662_v55 = vsel %vm62_vm0, %v1656_v54, -inf  ;;  %v1655_v56 = vadd.f32 %v3950_v38, %v1651_v27 }
 0xe7f   :  { %1663 = vmax.xlane.f32.xlu1 %v1662_v55  ;;  %v1642_v59 = vpop.f32.mrf.mxu1 }
 0xe80   :  { %v1653_v58 = vmul.f32 0.25, %v1642_v59  ;;  %v1659_v61 = vsel %vm62_vm0, %v1655_v56, -inf  ;;  %v1658_v62 = vadd.f32 %v3957_v60, %v1654_v41  ;;  %v2860_v59 = vld [vmem:[%s4170_s7 + $0x20] sm:$0xff] }
 0xe81   :  { %1660 = vmax.xlane.f32.xlu0 %v1659_v61 }
 0xe82   :  { %v1668_v63 = vsel %vm62_vm0, %v1658_v62, -inf  ;;  %v1657_v2 = vadd.f32 %v3964_v0, %v1653_v58 }
 0xe84   :  { %v1665_v4 = vsel %vm62_vm0, %v1657_v2, -inf }
 0xe85   :  { %1669 = vmax.xlane.f32.xlu0 %v1668_v63 }
 0xe89   :  { %1666 = vmax.xlane.f32.xlu0 %v1665_v4 }
 0xe90   :  { %1707 = vrot.lane.b32.xlu1 %v3914_v47, %s3475_s26 }
 0xe94   :  { %1705 = vrot.lane.b32.xlu1 %v3920_v48, %s3475_s26 }
 0xe98   :  { %1703 = vrot.lane.b32.xlu1 %v3908_v44, %s3475_s26 }
 0xe9f   :  { %1709 = vrot.lane.b32.xlu0 %v3912_v15, %s3475_s26 }
 0xf08   :  { %v1664_v7 = vpop.xlane.xlu1 %1663 }
 0xf09   :  { %v1672_v8 = vsub.f32 %v1656_v54, %v1664_v7 }
 0xf0a   :  { %v1661_v9 = vpop.xlane.xlu0 %1660 }
 0xf0b   :  { %v1677_v5 = vmul.f32 1.442695, %v1672_v8  ;;  %v1671_v3 = vsub.f32 %v1655_v56, %v1661_v9  ;;  %v2861_v56 = vld [vmem:[%s4170_s7 + $0x28] sm:$0xff] }
 0xf0c   :  { %v1708_v1 = vpop.permute.xlu1 %1707 }
 0xf0d   :  { %3414 = vpow2.f32 %v1677_v5  ;;  %v1675_v10 = vmul.f32 1.442695, %v1671_v3 }
 0xf0e   :  { %v1670_v6 = vpop.xlane.xlu0 %1669 }
 0xf0f   :  { %3416 = vpow2.f32 %v1675_v10  ;;  %v1674_v22 = vsub.f32 %v1658_v62, %v1670_v6 }
 0xf10   :  { %v1706_v13 = vpop.permute.xlu1 %1705 }
 0xf11   :  { %v1681_v24 = vmul.f32 1.442695, %v1674_v22 }
 0xf12   :  { %v1667_v11 = vpop.xlane.xlu0 %1666 }
 0xf13   :  { %v1673_v23 = vsub.f32 %v1657_v2, %v1667_v11  ;;  %3418 = vpow2.f32 %v1681_v24 }
 0xf14   :  { %v1704_v20 = vpop.permute.xlu1 %1703 }
 0xf15   :  { %v1679_v25 = vmul.f32 1.442695, %v1673_v23 }
 0xf16   :  { %v1710_v14 = vpop.permute.xlu0 %1709 }
 0xf17   :  { %3234 = vmatprep.subr.mxu0 %v1710_v14  ;;  %3420 = vpow2.f32 %v1679_v25 }
 0xf18   :  { %3235 = vmatpush3.msra.mxu0 %v1710_v14 }
 0xf19   :  { %3236 = vmatprep.subr.mxu0 %v1708_v1 }
 0xf1a   :  { %v3415_v16 = vpop.eup %3414  ;;  %3237 = vmatpush3.msra.mxu0 %v1708_v1 }
 0xf1b   :  { %3238 = vmatprep.subr.mxu0 %v1706_v13  ;;  %v1686_v17 = vsel %vm62_vm0, %v3415_v16, 0.0 }
 0xf1c   :  { %v3417_v18 = vpop.eup %3416  ;;  %1687 = vadd.xlane.f32.xlu1 %v1686_v17  ;;  %3239 = vmatpush3.msra.mxu0 %v1706_v13 }
 0xf1d   :  { %3240 = vmatprep.subr.mxu0 %v1704_v20  ;;  %v1683_v21 = vsel %vm62_vm0, %v3417_v18, 0.0 }
 0xf1e   :  { %1684 = vadd.xlane.f32.xlu0 %v1683_v21  ;;  %3241 = vmatpush3.msra.mxu0 %v1704_v20 }
 0xf20   :  { %v3419_v26 = vpop.eup %3418 }
 0xf21   :  { %v1692_v31 = vsel %vm62_vm0, %v3419_v26, 0.0 }
 0xf24   :  { %v3421_v28 = vpop.eup %3420 }
 0xf25   :  { %v1689_v32 = vsel %vm62_vm0, %v3421_v28, 0.0 }
 0xf2d   :  { %1824 = vrot.lane.b32.xlu1 %v3914_v47, %s3476_s27 }
 0xf34   :  { %1826 = vrot.lane.b32.xlu0 %v3912_v15, %s3476_s27 }
 0xf51   :  { %1693 = vadd.xlane.f32.xlu1 %v1692_v31 }
 0xf53   :  { %1690 = vadd.xlane.f32.xlu0 %v1689_v32 }
 0xf62   :  { %1820 = vrot.lane.b32.xlu1 %v3908_v44, %s3476_s27 }
 0xf66   :  { %1814 = vrot.lane.b32.xlu1 %v3920_v48, %s3477_s28 }
 0xf69   :  { %1822 = vrot.lane.b32.xlu0 %v3920_v48, %s3476_s27 }
 0xf6a   :  { %1818 = vrot.lane.b32.xlu1 %v3912_v15, %s3477_s28 }
 0xf6d   :  { %1812 = vrot.lane.b32.xlu0 %v3908_v44, %s3477_s28 }
 0xf71   :  { %1816 = vrot.lane.b32.xlu0 %v3914_v47, %s3477_s28 }
 0xfa5   :  { %v1688_v34 = vpop.xlane.xlu1 %1687 }
 0xfa6   :  { %3422 = vrcp.f32 %v1688_v34 }
 0xfa7   :  { %v1685_v36 = vpop.xlane.xlu0 %1684 }
 0xfa8   :  { %3424 = vrcp.f32 %v1685_v36 }
 0xfa9   :  { %v1825_v46 = vpop.permute.xlu1 %1824 }
 0xfab   :  { %v1827_v37 = vpop.permute.xlu0 %1826 }
 0xfac   :  { %3248 = vmatprep.subr.msk.mxu0 %vm264_vm1, %v1827_v37 }
 0xfb3   :  { %v3423_v42 = vpop.eup %3422 }
 0xfb4   :  { %v1700_v45 = vmul.f32 %v3423_v42, %v3415_v16 }
 0xfb5   :  { %v3425_v43 = vpop.eup %3424 }
 0xfb6   :  { %v1699_v12 = vmul.f32 %v3425_v43, %v3417_v18 }
 0xfb8   :  { %3242 = vmatprep.mubr.msk.f32.mxu0 %vm62_vm0, %v1699_v12 }
 0xfb9   :  { %3243 = vmatmul.mubr.msk.f32.vlgmr.msra.gmra.mxu0 %vm62_vm0, %v1700_v45 }
 0xfba   :  { %3249 = vmatpush3.xpose.msk.msra.mxu0 %vm264_vm1, %v1827_v37 }
 0xfbb   :  { %3250 = vmatprep.subr.msk.mxu0 %vm264_vm1, %v1825_v46 }
 0xfbe   :  { %3251 = vmatpush3.xpose.msk.msra.mxu0 %vm264_vm1, %v1825_v46 }
 0xfda   :  { %v1694_v35 = vpop.xlane.xlu1 %1693 }
 0xfdb   :  { %3426 = vrcp.f32 %v1694_v35 }
 0xfdc   :  { %v1691_v57 = vpop.xlane.xlu0 %1690 }
 0xfdd   :  { %3428 = vrcp.f32 %v1691_v57 }
 0xfde   :  { %v1821_v49 = vpop.permute.xlu1 %1820 }
 0xfe0   :  { %v1823_v33 = vpop.permute.xlu0 %1822 }
 0xfe1   :  { %3252 = vmatprep.subr.msk.mxu0 %vm264_vm1, %v1823_v33 }
 0xfe2   :  { %3253 = vmatpush3.xpose.msk.msra.mxu0 %vm264_vm1, %v1823_v33  ;;  %v1815_v19 = vpop.permute.xlu1 %1814 }
 0xfe3   :  { %3254 = vmatprep.subr.msk.mxu0 %vm264_vm1, %v1821_v49 }
 0xfe4   :  { %v1813_v27 = vpop.permute.xlu0 %1812 }
 0xfe6   :  { %3255 = vmatpush3.xpose.msk.msra.mxu0 %vm264_vm1, %v1821_v49  ;;  %v1819_v55 = vpop.permute.xlu1 %1818 }
 0xfe7   :  { %3286 = vmatprep.subr.mxu0 %v2861_v56 }
 0xfe8   :  { %v3427_v50 = vpop.eup %3426  ;;  %v1817_v41 = vpop.permute.xlu0 %1816 }
 0xfe9   :  { %v1702_v54 = vmul.f32 %v3427_v50, %v3419_v26 }
 0xfea   :  { %v3429_v52 = vpop.eup %3428 }
 0xfeb   :  { %v1701_v51 = vmul.f32 %v3429_v52, %v3421_v28 }
 0xfed   :  { %3245 = vmatprep.mubr.msk.f32.mxu0 %vm62_vm0, %v1701_v51  ;;  %v2863_v51 = vld [vmem:[%s4170_s7 + $0x38] sm:$0xff] }
 0xfee   :  { %3246 = vmatmul.mubr.msk.f32.gmra.mxu0 %vm62_vm0, %v1702_v54 }
 0xfef   :  { %3256 = vmatprep.mubr.msk.f32.mxu0 %vm264_vm1, %v1813_v27 }
 0xff2   :  { %3257 = vmatmul.mubr.msk.f32.vlgmr.msra.gmra.mxu0 %vm264_vm1, %v1815_v19 }
 0xff3   :  { %3259 = vmatprep.mubr.msk.f32.mxu0 %vm264_vm1, %v1817_v41  ;;  %3287 = vmatpush3.msra.mxu0 %v2861_v56 }
 0xff4   :  { %3288 = vmatprep.subr.mxu0 %v2860_v59 }
 0xff5   :  { %3289 = vmatpush3.msra.mxu0 %v2860_v59 }
 0xff6   :  { %3260 = vmatmul.mubr.msk.f32.gmra.mxu0 %vm264_vm1, %v1819_v55  ;;  %v2862_v55 = vld [vmem:[%s4170_s7 + $0x30] sm:$0xff] }
0x1079   :  { %v3244_v58 = vpop.f32.mrf.mxu0 }
0x107b   :  { %v1793_v61 = vpop.f32.mrf.mxu0 }
0x107c   :  { %3290 = vmatprep.mubr.msk.f32.mxu0 %vm264_vm1, %v1793_v61 }
0x107d   :  { %3291 = vmatmul.mubr.msk.f32.vlgmr.msra.gmra.mxu0 %vm264_vm1, %v3244_v58 }
0x10ae   :  { %v3247_v62 = vpop.f32.mrf.mxu0 }
0x10b0   :  { %v1803_v63 = vpop.f32.mrf.mxu0 }
0x10b1   :  { %3293 = vmatprep.mubr.msk.f32.mxu0 %vm264_vm1, %v1803_v63 }
0x10b2   :  { %v3258_v2 = vpop.f32.mrf.mxu0  ;;  %3294 = vmatmul.mubr.msk.f32.gmra.mxu0 %vm264_vm1, %v3247_v62 }
0x10b3   :  { %v1930_v4 = vmul.f32 0.25, %v3258_v2 }
0x10b4   :  { %v1910_v7 = vpop.f32.mrf.mxu0 }
0x10b5   :  { %v1929_v8 = vmul.f32 0.25, %v1910_v7  ;;  %v1934_v9 = vadd.f32 %v3943_v53, %v1930_v4  ;;  %v2897_v4 = vld [vmem:[%s4171_s8 + $0x1] ss:$0 sm:$0xff] }
0x10b6   :  { %v3261_v5 = vpop.f32.mrf.mxu0 }
0x10b7   :  { %v1940_v3 = vsel %vm62_vm0, %v1934_v9, -inf  ;;  %v1933_v10 = vadd.f32 %v3950_v38, %v1929_v8  ;;  %v1932_v1 = vmul.f32 0.25, %v3261_v5 }
0x10b8   :  { %1941 = vmax.xlane.f32.xlu1 %v1940_v3  ;;  %v1920_v6 = vpop.f32.mrf.mxu0 }
0x10b9   :  { %v1931_v11 = vmul.f32 0.25, %v1920_v6  ;;  %v1937_v13 = vsel %vm62_vm0, %v1933_v10, -inf  ;;  %v1936_v17 = vadd.f32 %v3957_v60, %v1932_v1 }
0x10ba   :  { %1938 = vmax.xlane.f32.xlu0 %v1937_v13 }
0x10bb   :  { %v1935_v14 = vadd.f32 %v3964_v0, %v1931_v11  ;;  %v1946_v53 = vsel %vm62_vm0, %v1936_v17, -inf }
0x10bd   :  { %v1943_v16 = vsel %vm62_vm0, %v1935_v14, -inf }
0x10be   :  { %1944 = vmax.xlane.f32.xlu0 %v1943_v16 }
0x10c2   :  { %1947 = vmax.xlane.f32.xlu0 %v1946_v53 }
0x113d   :  { %v3292_v62 = vpop.f32.mrf.mxu0 }
0x113f   :  { %v2265_v63 = vpop.f32.mrf.mxu0 }
0x1141   :  { %v1942_v18 = vpop.xlane.xlu1 %1941 }
0x1142   :  { %v1950_v20 = vsub.f32 %v1934_v9, %v1942_v18 }
0x1143   :  { %v1939_v38 = vpop.xlane.xlu0 %1938 }
0x1144   :  { %v1955_v21 = vmul.f32 1.442695, %v1950_v20  ;;  %v1949_v22 = vsub.f32 %v1933_v10, %v1939_v38 }
0x1146   :  { %3430 = vpow2.f32 %v1955_v21  ;;  %v1953_v23 = vmul.f32 1.442695, %v1949_v22 }
0x1147   :  { %v1945_v24 = vpop.xlane.xlu0 %1944 }
0x1148   :  { %3432 = vpow2.f32 %v1953_v23  ;;  %v1951_v25 = vsub.f32 %v1935_v14, %v1945_v24 }
0x114a   :  { %v1957_v26 = vmul.f32 1.442695, %v1951_v25 }
0x114b   :  { %v1948_v0 = vpop.xlane.xlu0 %1947 }
0x114c   :  { %3434 = vpow2.f32 %v1957_v26  ;;  %v1952_v28 = vsub.f32 %v1936_v17, %v1948_v0 }
0x114e   :  { %v1959_v31 = vmul.f32 1.442695, %v1952_v28 }
0x1150   :  { %3436 = vpow2.f32 %v1959_v31 }
0x1153   :  { %v3431_v60 = vpop.eup %3430 }
0x1154   :  { %v1964_v32 = vsel %vm62_vm0, %v3431_v60, 0.0 }
0x1155   :  { %v3433_v34 = vpop.eup %3432  ;;  %1965 = vadd.xlane.f32.xlu1 %v1964_v32 }
0x1156   :  { %v1961_v36 = vsel %vm62_vm0, %v3433_v34, 0.0 }
0x1157   :  { %1962 = vadd.xlane.f32.xlu0 %v1961_v36 }
0x1159   :  { %v3435_v37 = vpop.eup %3434 }
0x115a   :  { %v1967_v42 = vsel %vm62_vm0, %v3435_v37, 0.0 }
0x115b   :  { %1968 = vadd.xlane.f32.xlu0 %v1967_v42 }
0x115d   :  { %v3437_v43 = vpop.eup %3436 }
0x115e   :  { %v1970_v12 = vsel %vm62_vm0, %v3437_v43, 0.0 }
0x115f   :  { %1971 = vadd.xlane.f32.xlu1 %v1970_v12 }
0x1170   :  { %1985 = vrot.lane.b32.xlu1 %v3914_v47, %s3478_s18 }
0x1171   :  { %1987 = vrot.lane.b32.xlu0 %v3912_v15, %s3478_s18 }
0x1172   :  { %v3295_v8 = vpop.f32.mrf.mxu0 }
0x1174   :  { %1983 = vrot.lane.b32.xlu1 %v3920_v48, %s3478_s18  ;;  %v2275_v13 = vpop.f32.mrf.mxu0 }
0x1178   :  { %1981 = vrot.lane.b32.xlu1 %v3908_v44, %s3478_s18 }
0x11de   :  { %v1966_v46 = vpop.xlane.xlu1 %1965 }
0x11e0   :  { %v1963_v45 = vpop.xlane.xlu0 %1962 }
0x11e1   :  { %3438 = vrcp.f32 %v1963_v45 }
0x11e2   :  { %3440 = vrcp.f32 %v1966_v46 }
0x11e4   :  { %v1969_v35 = vpop.xlane.xlu0 %1968 }
0x11e5   :  { %3442 = vrcp.f32 %v1969_v35 }
0x11e8   :  { %v1972_v57 = vpop.xlane.xlu1 %1971  ;;  %v1988_v33 = vpop.permute.xlu0 %1987 }
0x11e9   :  { %3444 = vrcp.f32 %v1972_v57  ;;  %3262 = vmatprep.subr.mxu1 %v1988_v33  ;;  %v2905_v57 = vld [vmem:[%s4172_s11 + $0x38] sm:$0xff] }
0x11ea   :  { %3263 = vmatpush3.msra.mxu1 %v1988_v33  ;;  %v2904_v33 = vld [vmem:[%s4172_s11 + $0x30] sm:$0xff] }
0x11ec   :  { %v1986_v47 = vpop.permute.xlu1 %1985 }
0x11ed   :  { %3264 = vmatprep.subr.mxu1 %v1986_v47 }
0x11ee   :  { %v3439_v15 = vpop.eup %3438  ;;  %3265 = vmatpush3.msra.mxu1 %v1986_v47  ;;  %v2903_v47 = vld [vmem:[%s4172_s11 + $0x28] sm:$0xff] }
0x11ef   :  { %v1977_v49 = vmul.f32 %v3439_v15, %v3433_v34  ;;  %v3441_v44 = vpop.eup %3440  ;;  %v2902_v15 = vld [vmem:[%s4172_s11 + $0x20] sm:$0xff] }
0x11f0   :  { %v1984_v48 = vpop.permute.xlu1 %1983  ;;  %v1978_v27 = vmul.f32 %v3441_v44, %v3431_v60 }
0x11f1   :  { %3266 = vmatprep.subr.mxu1 %v1984_v48  ;;  %3270 = vmatprep.mubr.msk.f32.mxu1 %vm62_vm0, %v1977_v49 }
0x11f2   :  { %3267 = vmatpush3.msra.mxu1 %v1984_v48  ;;  %v3443_v50 = vpop.eup %3442 }
0x11f3   :  { %v1979_v19 = vmul.f32 %v3443_v50, %v3435_v37 }
0x11f4   :  { %v1982_v52 = vpop.permute.xlu1 %1981 }
0x11f5   :  { %3268 = vmatprep.subr.mxu1 %v1982_v52 }
0x11f6   :  { %v3445_v54 = vpop.eup %3444  ;;  %3269 = vmatpush3.msra.mxu1 %v1982_v52 }
0x11f7   :  { %3271 = vmatmul.mubr.msk.f32.vlgmr.msra.gmra.mxu1 %vm62_vm0, %v1978_v27  ;;  %3276 = vmatprep.subr.mxu1 %v2863_v51  ;;  %v1980_v41 = vmul.f32 %v3445_v54, %v3437_v43 }
0x11f8   :  { %3273 = vmatprep.mubr.msk.f32.mxu1 %vm62_vm0, %v1979_v19  ;;  %3277 = vmatpush3.msra.mxu1 %v2863_v51 }
0x11f9   :  { %3278 = vmatprep.subr.mxu1 %v2862_v55 }
0x11fa   :  { %3279 = vmatpush3.msra.mxu1 %v2862_v55 }
0x11fb   :  { %3274 = vmatmul.mubr.msk.f32.gmra.mxu1 %vm62_vm0, %v1980_v41  ;;  %3296 = vmatprep.subr.mxu1 %v2905_v57 }
0x12b7   :  { %v3272_v56 = vpop.f32.mrf.mxu1 }
0x12b9   :  { %v2071_v59 = vpop.f32.mrf.mxu1 }
0x12ba   :  { %3280 = vmatprep.mubr.msk.f32.mxu1 %vm264_vm1, %v2071_v59 }
0x12bb   :  { %v3275_v58 = vpop.f32.mrf.mxu1  ;;  %3281 = vmatmul.mubr.msk.f32.vlgmr.msra.gmra.mxu1 %vm264_vm1, %v3272_v56 }
0x12bc   :  { %3297 = vmatpush3.msra.mxu1 %v2905_v57 }
0x12bd   :  { %v2081_v61 = vpop.f32.mrf.mxu1  ;;  %3298 = vmatprep.subr.mxu1 %v2904_v33 }
0x12be   :  { %3283 = vmatprep.mubr.msk.f32.mxu1 %vm264_vm1, %v2081_v61  ;;  %3299 = vmatpush3.msra.mxu1 %v2904_v33  ;;  %v2900_v61 = vld [vmem:[%s4173_s9 + $0x1] ss:$0 sm:$0xff] }
0x12bf   :  { %3284 = vmatmul.mubr.msk.f32.gmra.mxu1 %vm264_vm1, %v3275_v58  ;;  %3300 = vmatprep.subr.mxu1 %v2903_v47 }
0x12c0   :  { %3301 = vmatpush3.msra.mxu1 %v2903_v47 }
0x12c1   :  { %3302 = vmatprep.subr.mxu1 %v2902_v15 }
0x12c2   :  { %3303 = vmatpush3.msra.mxu1 %v2902_v15 }
0x137b   :  { %v3282_v2 = vpop.f32.mrf.mxu1 }
0x137c   :  { %v2271_v7 = vadd.f32 %v3292_v62, %v3282_v2 }
0x137d   :  { %v2168_v9 = vpop.f32.mrf.mxu1 }
0x137e   :  { %v2293_v5 = vadd.f32 %v2897_v4, %v2271_v7  ;;  %v2266_v3 = vadd.f32 %v2265_v63, %v2168_v9 }
0x137f   :  { %v3285_v10 = vpop.f32.mrf.mxu1 }
0x1380   :  { %v2292_v6 = vadd.f32 %v2897_v4, %v2266_v3  ;;  %v2281_v1 = vadd.f32 %v3295_v8, %v3285_v10  ;;  %v2297_v11 = vadd.f32 %v2293_v5, %v3891_v30 }
0x1381   :  { %v2178_v14 = vpop.f32.mrf.mxu1 }
0x1382   :  { %v2276_v16 = vadd.f32 %v2275_v13, %v2178_v14  ;;  %v2307_v17 = vsel %vm62_vm0, %v2297_v11, 0.0  ;;  %v2296_v53 = vadd.f32 %v2292_v6, %v3889_v29  ;;  %v2295_v18 = vadd.f32 %v2897_v4, %v2281_v1 }
0x1383   :  { %2308 = vadd.xlane.f32.xlu1 %v2307_v17  ;;  %v2918_v17 = vld [vmem:[%s4175_s13 + $0x70] sm:$0xff] }
0x1384   :  { %v2294_v20 = vadd.f32 %v2897_v4, %v2276_v16  ;;  %v2304_v38 = vsel %vm62_vm0, %v2296_v53, 0.0  ;;  %v2299_v23 = vadd.f32 %v2295_v18, %v3899_v40  ;;  %v2901_v4 = vld [vmem:[%s4174_s10 + $0x1] ss:$0 sm:$0xff]  ;;  %v2919_v16 = vld [vmem:[%s4175_s13 + $0x78] sm:$0xff] }
0x1385   :  { %2305 = vadd.xlane.f32.xlu0 %v2304_v38  ;;  %3310 = vmatprep.subr.mxu0 %v2919_v16  ;;  %v2916_v18 = vld [vmem:[%s4175_s13 + $0x60] sm:$0xff]  ;;  %v2914_v38 = vld [vmem:[%s4175_s13 + $0x50] sm:$0xff] }
0x1386   :  { %v2298_v21 = vadd.f32 %v2294_v20, %v3897_v39  ;;  %v2313_v30 = vsel %vm62_vm0, %v2299_v23, 0.0  ;;  %3311 = vmatpush3.msra.mxu0 %v2919_v16  ;;  %v2915_v20 = vld [vmem:[%s4175_s13 + $0x58] sm:$0xff] }
0x1387   :  { %3312 = vmatprep.subr.mxu0 %v2918_v17 }
0x1388   :  { %v2310_v22 = vsel %vm62_vm0, %v2298_v21, 0.0  ;;  %3313 = vmatpush3.msra.mxu0 %v2918_v17 }
0x1389   :  { %2311 = vadd.xlane.f32.xlu0 %v2310_v22  ;;  %v2912_v22 = vld [vmem:[%s4175_s13 + $0x40] sm:$0xff] }
0x138d   :  { %2314 = vadd.xlane.f32.xlu0 %v2313_v30 }
0x140c   :  { %v2309_v24 = vpop.xlane.xlu1 %2308 }
0x140d   :  { %v2317_v25 = vmul.f32 0.03125, %v2309_v24 }
0x140e   :  { %v2306_v26 = vpop.xlane.xlu0 %2305 }
0x140f   :  { %v2321_v29 = vsub.f32 %v2297_v11, %v2317_v25  ;;  %v2316_v0 = vmul.f32 0.03125, %v2306_v26 }
0x1411   :  { %v2320_v28 = vsub.f32 %v2296_v53, %v2316_v0  ;;  %v2325_v31 = vmul.f32 %v2321_v29, %v2321_v29  ;;  %v2917_v53 = vld [vmem:[%s4175_s13 + $0x68] sm:$0xff] }
0x1412   :  { %v2312_v60 = vpop.xlane.xlu0 %2311  ;;  %3314 = vmatprep.subr.mxu0 %v2917_v53 }
0x1413   :  { %v2318_v32 = vmul.f32 0.03125, %v2312_v60  ;;  %v2331_v34 = vsel %vm62_vm0, %v2325_v31, 0.0  ;;  %v2324_v39 = vmul.f32 %v2320_v28, %v2320_v28  ;;  %3315 = vmatpush3.msra.mxu0 %v2917_v53 }
0x1414   :  { %2332 = vadd.xlane.f32.xlu1 %v2331_v34  ;;  %3316 = vmatprep.subr.mxu0 %v2916_v18 }
0x1415   :  { %v2322_v36 = vsub.f32 %v2298_v21, %v2318_v32  ;;  %v2328_v40 = vsel %vm62_vm0, %v2324_v39, 0.0  ;;  %3317 = vmatpush3.msra.mxu0 %v2916_v18  ;;  %v2913_v21 = vld [vmem:[%s4175_s13 + $0x48] sm:$0xff] }
0x1416   :  { %2329 = vadd.xlane.f32.xlu0 %v2328_v40  ;;  %v2315_v37 = vpop.xlane.xlu0 %2314  ;;  %3318 = vmatprep.subr.mxu0 %v2915_v20 }
0x1417   :  { %v2319_v42 = vmul.f32 0.03125, %v2315_v37  ;;  %v2326_v43 = vmul.f32 %v2322_v36, %v2322_v36  ;;  %3319 = vmatpush3.msra.mxu0 %v2915_v20 }
0x1418   :  { %3320 = vmatprep.subr.mxu0 %v2914_v38 }
0x1419   :  { %v2323_v12 = vsub.f32 %v2299_v23, %v2319_v42  ;;  %v2334_v45 = vsel %vm62_vm0, %v2326_v43, 0.0  ;;  %3321 = vmatpush3.msra.mxu0 %v2914_v38  ;;  %v2907_v23 = vld [vmem:[%s4176_s12 + $0x1] ss:$0 sm:$0xff] }
0x141a   :  { %2335 = vadd.xlane.f32.xlu0 %v2334_v45  ;;  %3322 = vmatprep.subr.mxu0 %v2913_v21 }
0x141b   :  { %v2327_v46 = vmul.f32 %v2323_v12, %v2323_v12  ;;  %3323 = vmatpush3.msra.mxu0 %v2913_v21 }
0x141c   :  { %3324 = vmatprep.subr.mxu0 %v2912_v22 }
0x141d   :  { %v2337_v35 = vsel %vm62_vm0, %v2327_v46, 0.0  ;;  %3325 = vmatpush3.msra.mxu0 %v2912_v22 }
0x141e   :  { %2338 = vadd.xlane.f32.xlu1 %v2337_v35 }
0x149d   :  { %v2333_v49 = vpop.xlane.xlu1 %2332 }
0x149e   :  { %v2341_v48 = vmul.f32 0.03125, %v2333_v49 }
0x149f   :  { %v2330_v44 = vpop.xlane.xlu0 %2329 }
0x14a0   :  { %v2345_v50 = vadd.f32 1e-12, %v2341_v48  ;;  %v2340_v52 = vmul.f32 0.03125, %v2330_v44 }
0x14a2   :  { %3446 = vrsqrt.f32 %v2345_v50  ;;  %v2344_v51 = vadd.f32 1e-12, %v2340_v52 }
0x14a3   :  { %v2336_v27 = vpop.xlane.xlu0 %2335 }
0x14a4   :  { %3448 = vrsqrt.f32 %v2344_v51  ;;  %v2342_v54 = vmul.f32 0.03125, %v2336_v27 }
0x14a6   :  { %v2346_v19 = vadd.f32 1e-12, %v2342_v54 }
0x14a7   :  { %v2339_v41 = vpop.xlane.xlu1 %2338 }
0x14a8   :  { %3450 = vrsqrt.f32 %v2346_v19  ;;  %v2343_v55 = vmul.f32 0.03125, %v2339_v41 }
0x14aa   :  { %v2347_v56 = vadd.f32 1e-12, %v2343_v55 }
0x14ac   :  { %3452 = vrsqrt.f32 %v2347_v56 }
0x14af   :  { %v3447_v59 = vpop.eup %3446 }
0x14b0   :  { %v2353_v58 = vmul.f32 %v3447_v59, %v2321_v29 }
0x14b1   :  { %v3449_v62 = vpop.eup %3448 }
0x14b2   :  { %v2352_v63 = vmul.f32 %v3449_v62, %v2320_v28  ;;  %v2363_v2 = vmul.f32 %v2900_v61, %v2353_v58 }
0x14b4   :  { %v2362_v7 = vmul.f32 %v2900_v61, %v2352_v63  ;;  %v4091_v3 = vadd.f32 %v2901_v4, %v2363_v2 }
0x14b5   :  { %v3451_v8 = vpop.eup %3450 }
0x14b6   :  { %v4089_v9 = vadd.f32 %v2901_v4, %v2362_v7  ;;  %v2354_v5 = vmul.f32 %v3451_v8, %v2322_v36  ;;  %v2921_v8 = vld [vmem:[%s4177_s14 + $0x1] ss:$0 sm:$0xff] }
0x14b8   :  { %3304 = vmatprep.mubr.msk.f32.mxu1 %vm62_vm0, %v4089_v9  ;;  %v2364_v10 = vmul.f32 %v2900_v61, %v2354_v5 }
0x14b9   :  { %v3453_v6 = vpop.eup %3452  ;;  %3305 = vmatmul.mubr.msk.f32.vlgmr.msra.gmra.mxu1 %vm62_vm0, %v4091_v3 }
0x14ba   :  { %v4097_v1 = vadd.f32 %v2901_v4, %v2364_v10  ;;  %v2355_v11 = vmul.f32 %v3453_v6, %v2323_v12 }
0x14bc   :  { %3307 = vmatprep.mubr.msk.f32.mxu1 %vm62_vm0, %v4097_v1  ;;  %v2365_v13 = vmul.f32 %v2900_v61, %v2355_v11 }
0x14be   :  { %v4101_v14 = vadd.f32 %v2901_v4, %v2365_v13 }
0x14c0   :  { %3308 = vmatmul.mubr.msk.f32.gmra.mxu1 %vm62_vm0, %v4101_v14 }
0x1579   :  { %v3306_v30 = vpop.f32.mrf.mxu1 }
0x157a   :  { %v2473_v24 = vadd.f32 %v3306_v30, %v2907_v23 }
0x157b   :  { %v2467_v25 = vpop.f32.mrf.mxu1 }
0x157c   :  { %v2487_v26 = vmul.f32 %v2473_v24, %v2473_v24  ;;  %v2468_v29 = vadd.f32 %v2907_v23, %v2467_v25 }
0x157e   :  { %v2491_v0 = vmul.f32 %v2487_v26, %v2473_v24  ;;  %v2486_v28 = vmul.f32 %v2468_v29, %v2468_v29 }
0x1580   :  { %v2495_v31 = vmul.f32 0.044715, %v2491_v0  ;;  %v2490_v60 = vmul.f32 %v2486_v28, %v2468_v29  ;;  %v3309_v32 = vpop.f32.mrf.mxu1 }
0x1581   :  { %v2483_v34 = vadd.f32 %v3309_v32, %v2907_v23 }
0x1582   :  { %v2499_v39 = vadd.f32 %v2495_v31, %v2473_v24  ;;  %v2494_v36 = vmul.f32 0.044715, %v2490_v60  ;;  %v2477_v40 = vpop.f32.mrf.mxu1 }
0x1583   :  { %v2489_v37 = vmul.f32 %v2483_v34, %v2483_v34  ;;  %v2478_v42 = vadd.f32 %v2907_v23, %v2477_v40 }
0x1584   :  { %v2503_v43 = vmul.f32 0.7978846, %v2499_v39  ;;  %v2498_v12 = vadd.f32 %v2494_v36, %v2468_v29 }
0x1585   :  { %v2493_v45 = vmul.f32 %v2489_v37, %v2483_v34  ;;  %v2488_v46 = vmul.f32 %v2478_v42, %v2478_v42 }
0x1586   :  { %3454 = vtanh.f32 %v2503_v43  ;;  %v2502_v35 = vmul.f32 0.7978846, %v2498_v12  ;;  %v3479_v12 = vmov 0.0  }
0x1587   :  { %v2497_v57 = vmul.f32 0.044715, %v2493_v45  ;;  %v2492_v33 = vmul.f32 %v2488_v46, %v2478_v42  ;;  %3332 = vmatprep.subr.mxu1 %v3479_v12  ;;  %3340 = vmatprep.mubr.msk.f32.mxu1 %vm3480_vm3, %v3479_v12 }
0x1588   :  { %3456 = vtanh.f32 %v2502_v35 }
0x1589   :  { %v2501_v47 = vadd.f32 %v2497_v57, %v2483_v34  ;;  %v2496_v15 = vmul.f32 0.044715, %v2492_v33 }
0x158b   :  { %v2505_v49 = vmul.f32 0.7978846, %v2501_v47  ;;  %v2500_v48 = vadd.f32 %v2496_v15, %v2478_v42 }
0x158d   :  { %3458 = vtanh.f32 %v2505_v49  ;;  %v2504_v44 = vmul.f32 0.7978846, %v2500_v48 }
0x158f   :  { %3460 = vtanh.f32 %v2504_v44 }
0x1593   :  { %v3455_v50 = vpop.eup %3454 }
0x1594   :  { %v2511_v52 = vadd.f32 1.0, %v3455_v50 }
0x1595   :  { %v3457_v51 = vpop.eup %3456 }
0x1596   :  { %v2510_v27 = vadd.f32 1.0, %v3457_v51  ;;  %v2515_v54 = vmul.f32 0.5, %v2511_v52 }
0x1598   :  { %v2514_v19 = vmul.f32 0.5, %v2510_v27  ;;  %v2519_v56 = vmul.f32 %v2515_v54, %v2473_v24  ;;  %v2928_v27 = vld [vmem:[%s4178_s15 + $0x1] ss:$0 sm:$0xff] }
0x159a   :  { %v3459_v41 = vpop.eup %3458  ;;  %v2518_v55 = vmul.f32 %v2514_v19, %v2468_v29 }
0x159b   :  { %v2513_v59 = vadd.f32 1.0, %v3459_v41  ;;  %v2929_v41 = vld [vmem:[%s4179_s16 + $0x1] ss:$0 sm:$0xff] }
0x159c   :  { %v3461_v58 = vpop.eup %3460  ;;  %3326 = vmatprep.mubr.msk.f32.mxu0 %vm1247_vm2, %v2518_v55 }
0x159d   :  { %3327 = vmatmul.mubr.msk.f32.vlgmr.msra.gmra.mxu0 %vm1247_vm2, %v2519_v56  ;;  %v2512_v61 = vadd.f32 1.0, %v3461_v58  ;;  %v2517_v62 = vmul.f32 0.5, %v2513_v59 }
0x159f   :  { %v2516_v63 = vmul.f32 0.5, %v2512_v61  ;;  %v2521_v4 = vmul.f32 %v2517_v62, %v2483_v34 }
0x15a1   :  { %v2520_v2 = vmul.f32 %v2516_v63, %v2478_v42 }
0x15a3   :  { %3329 = vmatprep.mubr.msk.f32.mxu0 %vm1247_vm2, %v2520_v2 }
0x15a4   :  { %3330 = vmatmul.mubr.msk.f32.gmra.mxu0 %vm1247_vm2, %v2521_v4 }
0x165d   :  { %v3328_v7 = vpop.f32.mrf.mxu0 }
0x165e   :  { %v2623_v6 = vadd.f32 %v3328_v7, %v2921_v8 }
0x165f   :  { %v2617_v5 = vpop.f32.mrf.mxu0 }
0x1660   :  { %v2618_v16 = vadd.f32 %v2921_v8, %v2617_v5  ;;  %v2637_v18 = vadd.f32 %v2623_v6, %v4091_v3  ;;  %v2716_v6 = vld [vmem:[%s4180_s2] sm:$0xf] }
0x1662   :  { %v2636_v21 = vadd.f32 %v2618_v16, %v4089_v9  ;;  %v2647_v23 = vsel %vm62_vm0, %v2637_v18, 0.0 }
0x1664   :  { %v3331_v10 = vpop.f32.mrf.mxu0  ;;  %v2644_v30 = vsel %vm62_vm0, %v2636_v21, 0.0 }
0x1665   :  { %v2633_v11 = vadd.f32 %v3331_v10, %v2921_v8 }
0x1666   :  { %v2627_v13 = vpop.f32.mrf.mxu0 }
0x1667   :  { %v2639_v17 = vadd.f32 %v2633_v11, %v4101_v14  ;;  %v2628_v53 = vadd.f32 %v2921_v8, %v2627_v13 }
0x1669   :  { %v2638_v20 = vadd.f32 %v2628_v53, %v4097_v1  ;;  %v2653_v38 = vsel %vm62_vm0, %v2639_v17, 0.0 }
0x166a   :  { %2654 = vadd.xlane.f32.xlu0 %v2653_v38 }
0x166b   :  { %v2650_v22 = vsel %vm62_vm0, %v2638_v20, 0.0 }
0x166c   :  { %2651 = vadd.xlane.f32.xlu1 %v2650_v22 }
0x166e   :  { %2648 = vadd.xlane.f32.xlu0 %v2647_v23 }
0x1670   :  { %2645 = vadd.xlane.f32.xlu1 %v2644_v30 }
0x16f3   :  { %v2655_v14 = vpop.xlane.xlu0 %2654 }
0x16f4   :  { %v2659_v24 = vmul.f32 0.03125, %v2655_v14 }
0x16f5   :  { %v2652_v25 = vpop.xlane.xlu1 %2651 }
0x16f6   :  { %v2663_v3 = vsub.f32 %v2639_v17, %v2659_v24  ;;  %v2658_v26 = vmul.f32 0.03125, %v2652_v25 }
0x16f7   :  { %v2649_v1 = vpop.xlane.xlu0 %2648 }
0x16f8   :  { %v2662_v29 = vsub.f32 %v2638_v20, %v2658_v26  ;;  %v2657_v0 = vmul.f32 0.03125, %v2649_v1  ;;  %v2667_v28 = vmul.f32 %v2663_v3, %v2663_v3 }
0x16f9   :  { %v2646_v31 = vpop.xlane.xlu1 %2645 }
0x16fa   :  { %v2661_v9 = vsub.f32 %v2637_v18, %v2657_v0  ;;  %v2656_v60 = vmul.f32 0.03125, %v2646_v31  ;;  %v2677_v32 = vsel %vm62_vm0, %v2667_v28, 0.0  ;;  %v2666_v34 = vmul.f32 %v2662_v29, %v2662_v29 }
0x16fb   :  { %2678 = vadd.xlane.f32.xlu0 %v2677_v32 }
0x16fc   :  { %v2660_v39 = vsub.f32 %v2636_v21, %v2656_v60  ;;  %v2674_v36 = vsel %vm62_vm0, %v2666_v34, 0.0  ;;  %v2665_v40 = vmul.f32 %v2661_v9, %v2661_v9 }
0x16fd   :  { %2675 = vadd.xlane.f32.xlu1 %v2674_v36 }
0x16fe   :  { %v2671_v37 = vsel %vm62_vm0, %v2665_v40, 0.0  ;;  %v2664_v42 = vmul.f32 %v2660_v39, %v2660_v39 }
0x16ff   :  { %2672 = vadd.xlane.f32.xlu0 %v2671_v37 }
0x1700   :  { %v2668_v43 = vsel %vm62_vm0, %v2664_v42, 0.0 }
0x1701   :  { %2669 = vadd.xlane.f32.xlu1 %v2668_v43 }
0x1784   :  { %v2679_v45 = vpop.xlane.xlu0 %2678 }
0x1785   :  { %v2683_v46 = vmul.f32 0.03125, %v2679_v45 }
0x1786   :  { %v2676_v35 = vpop.xlane.xlu1 %2675 }
0x1787   :  { %v2687_v57 = vadd.f32 1e-12, %v2683_v46  ;;  %v2682_v33 = vmul.f32 0.03125, %v2676_v35 }
0x1788   :  { %v2673_v47 = vpop.xlane.xlu0 %2672 }
0x1789   :  { %3462 = vrsqrt.f32 %v2687_v57  ;;  %v2686_v15 = vadd.f32 1e-12, %v2682_v33  ;;  %v2681_v49 = vmul.f32 0.03125, %v2673_v47 }
0x178a   :  { %v2670_v48 = vpop.xlane.xlu1 %2669 }
0x178b   :  { %3464 = vrsqrt.f32 %v2686_v15  ;;  %v2685_v44 = vadd.f32 1e-12, %v2681_v49  ;;  %v2680_v50 = vmul.f32 0.03125, %v2670_v48 }
0x178d   :  { %3466 = vrsqrt.f32 %v2685_v44  ;;  %v2684_v52 = vadd.f32 1e-12, %v2680_v50 }
0x178f   :  { %3468 = vrsqrt.f32 %v2684_v52 }
0x1796   :  { %v3463_v51 = vpop.eup %3462 }
0x1797   :  { %v2695_v54 = vmul.f32 %v3463_v51, %v2663_v3 }
0x1798   :  { %v3465_v19 = vpop.eup %3464 }
0x1799   :  { %v2705_v55 = vmul.f32 %v2928_v27, %v2695_v54  ;;  %v2694_v56 = vmul.f32 %v3465_v19, %v2662_v29 }
0x179a   :  { %v3467_v59 = vpop.eup %3466 }
0x179b   :  { %v2715_v58 = vadd.f32 %v2929_v41, %v2705_v55  ;;  %v2704_v61 = vmul.f32 %v2928_v27, %v2694_v56  ;;  %v2693_v62 = vmul.f32 %v3467_v59, %v2661_v9 }
0x179c   :  { %v3469_v63 = vpop.eup %3468 }
0x179d   :  { %3333 = vmatpush3.msra.mxu1 %v2715_v58  ;;  %v2714_v2 = vadd.f32 %v2929_v41, %v2704_v61  ;;  %v2703_v4 = vmul.f32 %v2928_v27, %v2693_v62  ;;  %v2692_v7 = vmul.f32 %v3469_v63, %v2660_v39 }
0x179e   :  { %3334 = vmatprep.subr.mxu1 %v3479_v12 }
0x179f   :  { %3335 = vmatpush3.msra.mxu1 %v2714_v2  ;;  %v2713_v8 = vadd.f32 %v2929_v41, %v2703_v4  ;;  %v2702_v5 = vmul.f32 %v2928_v27, %v2692_v7 }
0x17a0   :  { %3336 = vmatprep.subr.mxu1 %v3479_v12 }
0x17a1   :  { %3337 = vmatpush3.msra.mxu1 %v2713_v8  ;;  %v2712_v10 = vadd.f32 %v2929_v41, %v2702_v5 }
0x17a2   :  { %3338 = vmatprep.subr.mxu1 %v3479_v12 }
0x17a3   :  { %3339 = vmatpush3.msra.mxu1 %v2712_v10 }
0x17a4   :  { %3341 = vmatmul.mubr.msk.f32.vlgmr.msra.gmra.mxu1 %vm62_vm0, %v2716_v6 }
0x1864   :  { %v2786_v11 = vpop.f32.mrf.mxu1 }
0x1865   :  { %2791 = vst.msk [vmem:[%s4181_s17] sm:$0xf] %vm2790_vm4, %v2786_v11 }
0x1866   :  { %v3342_v13 = vpop.f32.mrf.mxu1 }

</bundles_post_ra>
